<compile_context>
chip_gen: v6e
topology: v6e:2x2x1
jax: 0.10.0
libtpu: 0.0.40
codegen_flags: <defaults>
</compile_context>

<pallas_src>
import numpy as np
import jax
import jax.numpy as jnp
from jax.experimental import pallas as pl
from jax.experimental.pallas import tpu as pltpu

PAD_IDX = 0  # dictionary.word2idx['<pad>']

_VMEM_LIMIT = 32 * 1024 * 1024  # explicit scoped-VMEM budget (safe on v5e/v6e/v7x)


def _pick_chunk(n, target):
    """Largest divisor of n that is <= target (and >= 1)."""
    c = max(1, min(n, target))
    while n % c:
        c -= 1
    return c


# --------------------------------------------------------------------------
# Bidirectional GRU layer: one pallas_call per layer.
#   grid = (2, T//Tc)  — axis 0: direction (parallel), axis 1: time chunks
#   (arbitrary, sequential).  The hidden state lives in a VMEM scratch that
#   persists across time chunks and is zeroed at the first chunk of each
#   direction.  Gate order follows PyTorch: (r, z, n), fused into 3H-wide
#   matmuls.  Output layout is (2, T, B, H): [0]=forward, [1]=backward.
# --------------------------------------------------------------------------
def _make_gru_kernel(n_parts, Tc, H):
    def kernel(*args):
        x_refs = args[:n_parts]
        wih_ref, whh_ref, bih_ref, bhh_ref, out_ref, h_ref = args[n_parts:]
        d = pl.program_id(0)  # 0 = forward, 1 = backward

        @pl.when(pl.program_id(1) == 0)
        def _():
            h_ref[...] = jnp.zeros_like(h_ref)

        wih = wih_ref[...]   # (I, 3H)
        whh = whh_ref[...]   # (H, 3H)
        bih = bih_ref[...]   # (1, 3H)
        bhh = bhh_ref[...]   # (1, 3H)

        h = h_ref[...]       # (B, H)
        # Statically unrolled time-chunk loop; forward walks rows 0..Tc-1,
        # backward walks Tc-1..0 within the (already time-reversed) chunk.
        for s in range(Tc):
            row = s + d * (Tc - 1 - 2 * s)
            if n_parts == 1:
                x_t = x_refs[0][row]                                   # (B, I)
            else:
                x_t = jnp.concatenate([xr[row] for xr in x_refs], axis=-1)
            gi = jnp.dot(x_t, wih, preferred_element_type=jnp.float32) + bih
            gh = jnp.dot(h, whh, preferred_element_type=jnp.float32) + bhh
            r = jax.nn.sigmoid(gi[:, :H] + gh[:, :H])
            z = jax.nn.sigmoid(gi[:, H:2 * H] + gh[:, H:2 * H])
            n = jnp.tanh(gi[:, 2 * H:] + r * gh[:, 2 * H:])
            h = (1.0 - z) * n + z * h
            out_ref[row] = h.astype(out_ref.dtype)
        h_ref[...] = h

    return kernel


def gru_bidir_layer(x_srcs, wih, whh, bih, bhh, *, time_chunk=8):
    """One bidirectional GRU layer.

    x_srcs: list of (array, part_index) feature sources; each array has shape
            (NP, T, B, F) and `part_index` selects its leading slot.  The
            sources are concatenated along the feature axis in VMEM.
    wih/whh/bih/bhh: fused per-direction weights, shapes
            (2, I, 3H), (2, H, 3H), (2, 1, 3H), (2, 1, 3H)  (gate order r,z,n).
    Returns (2, T, B, H): [0] = forward outputs, [1] = backward outputs.
    """
    T, B = x_srcs[0][0].shape[1], x_srcs[0][0].shape[2]
    H = whh.shape[1]
    Tc = _pick_chunk(T, time_chunk)
    nT = T // Tc

    def tidx(d, t):
        # forward (d==0): chunk t; backward (d==1): chunk nT-1-t
        return t + d * (nT - 1 - 2 * t)

    in_specs = []
    arrays = []
    for arr, p in x_srcs:
        F = arr.shape[-1]
        in_specs.append(
            pl.BlockSpec((None, Tc, B, F), lambda d, t, p=p: (p, tidx(d, t), 0, 0)))
        arrays.append(arr)
    I = wih.shape[1]
    in_specs += [
        pl.BlockSpec((None, I, 3 * H), lambda d, t: (d, 0, 0)),
        pl.BlockSpec((None, H, 3 * H), lambda d, t: (d, 0, 0)),
        pl.BlockSpec((None, 1, 3 * H), lambda d, t: (d, 0, 0)),
        pl.BlockSpec((None, 1, 3 * H), lambda d, t: (d, 0, 0)),
    ]
    out_spec = pl.BlockSpec((None, Tc, B, H), lambda d, t: (d, tidx(d, t), 0, 0))

    return pl.pallas_call(
        _make_gru_kernel(len(x_srcs), Tc, H),
        out_shape=jax.ShapeDtypeStruct((2, T, B, H), jnp.float32),
        grid=(2, nT),
        in_specs=in_specs,
        out_specs=out_spec,
        scratch_shapes=[pltpu.VMEM((B, H), jnp.float32)],
        compiler_params=pltpu.CompilerParams(
            dimension_semantics=("parallel", "arbitrary"),
            vmem_limit_bytes=_VMEM_LIMIT),
    )(*arrays, wih, whh, bih, bhh)


# --------------------------------------------------------------------------
# Fused attention + classifier kernel, batched over a block of TB examples.
# Attention weights are produced directly in (B, hops, T) layout (lane-dense
# stores, lane-axis softmax).  Classifier uses one fused matmul over the
# hop-flattened aggregate.
# --------------------------------------------------------------------------
def _attn_cls_kernel(inp_ref, mask_ref, ws1_ref, ws2_ref,
                     fcw_ref, fcb_ref, pw_ref, pb_ref,
                     pred_ref, attn_ref):
    inp = inp_ref[...]                       # (TB, T, 2H)
    TB, T, D2 = inp.shape
    hops = ws2_ref.shape[1]

    # hbar / scores as one big (TB*T, ·) matmul each (major-dim reshape only).
    inp2 = inp.reshape(TB * T, D2)
    hbar = jnp.tanh(jnp.dot(inp2, ws1_ref[...], preferred_element_type=jnp.float32))
    scores = jnp.dot(hbar, ws2_ref[...], preferred_element_type=jnp.float32)
    scores3 = scores.reshape(TB, T, hops)
    # Lane-dense (TB, hops, T) layout via small per-example 2-D transposes.
    alphas = jnp.stack([scores3[b].T for b in range(TB)], axis=0)  # (TB, hops, T)

    pen = alphas + (-10000.0) * mask_ref[...]            # mask: (TB, 1, T)
    m = jnp.max(pen, axis=-1, keepdims=True)
    e = jnp.exp(pen - m)
    denom = jnp.sum(e, axis=-1, keepdims=True)
    a = e * pl.reciprocal(denom, approx=True)            # (TB, hops, T)
    attn_ref[...] = a.astype(attn_ref.dtype)

    # out_agg[b,h,:] = sum_t a[b,h,t] * inp[b,t,:]  -> (TB, hops, 2H)
    out_agg = jnp.einsum("bht,btd->bhd", a, inp,
                         preferred_element_type=jnp.float32)

    # Flatten hop-major along lanes and run a single fused classifier matmul.
    flat = jnp.concatenate([out_agg[:, h, :] for h in range(hops)], axis=-1)
    fc = jnp.tanh(jnp.dot(flat, fcw_ref[...], preferred_element_type=jnp.float32)
                  + fcb_ref[...])
    pred = jnp.dot(fc, pw_ref[...], preferred_element_type=jnp.float32) + pb_ref[...]
    pred_ref[...] = pred.astype(pred_ref.dtype)


def attention_classifier(inp_btd, mask_b1t, ws1, ws2, fcw, fcb, pw, pb,
                         *, batch_block=8):
    B, T, D2 = inp_btd.shape
    A = ws1.shape[1]
    hops = ws2.shape[1]
    nfc = fcw.shape[1]
    ncls = pw.shape[1]
    TB = _pick_chunk(B, batch_block)
    zmap2 = lambda b: (0, 0)
    pred, attn = pl.pallas_call(
        _attn_cls_kernel,
        out_shape=(jax.ShapeDtypeStruct((B, ncls), jnp.float32),
                   jax.ShapeDtypeStruct((B, hops, T), jnp.float32)),
        grid=(B // TB,),
        in_specs=[
            pl.BlockSpec((TB, T, D2), lambda b: (b, 0, 0)),
            pl.BlockSpec((TB, 1, T), lambda b: (b, 0, 0)),
            pl.BlockSpec((D2, A), zmap2),
            pl.BlockSpec((A, hops), zmap2),
            pl.BlockSpec((hops * D2, nfc), zmap2),
            pl.BlockSpec((1, nfc), zmap2),
            pl.BlockSpec((nfc, ncls), zmap2),
            pl.BlockSpec((1, ncls), zmap2),
        ],
        out_specs=(pl.BlockSpec((TB, ncls), lambda b: (b, 0)),
                   pl.BlockSpec((TB, hops, T), lambda b: (b, 0, 0))),
        compiler_params=pltpu.CompilerParams(
            dimension_semantics=("parallel",),
            vmem_limit_bytes=_VMEM_LIMIT),
    )(inp_btd, mask_b1t, ws1, ws2, fcw, fcb, pw, pb)
    return pred, attn


# --------------------------------------------------------------------------
# Full RnnAtt forward
# --------------------------------------------------------------------------
def rnn_att_forward(tokens, params, *, time_chunk=8, batch_block=8):
    # tokens: (T, B) int32
    T, B = tokens.shape
    emb = params["emb"][tokens]               # embedding gather (plain-JAX glue)
    x_srcs = [(emb[None], 0)]                 # (1, T, B, ninp)
    out = None
    for layer in params["gru"]:
        out = gru_bidir_layer(x_srcs, layer["wih"], layer["whh"],
                              layer["bih"], layer["bhh"], time_chunk=time_chunk)
        # next layer reads the fwd/bwd halves directly (no HBM concatenate)
        x_srcs = [(out, 0), (out, 1)]

    # batch-major (B, T, 2H) with [fwd, bwd] feature order for the attention
    inp = jnp.transpose(out, (2, 1, 0, 3)).reshape(B, T, -1)
    mask = (tokens.T == PAD_IDX).astype(jnp.float32)[:, None, :]   # (B, 1, T)
    pred, attn = attention_classifier(inp, mask, params["ws1"], params["ws2"],
                                      params["fcw"], params["fcb"],
                                      params["pw"], params["pb"],
                                      batch_block=batch_block)
    # attention already in module layout: (batch, hops, seq)
    return pred, attn


# --------------------------------------------------------------------------
# Parameter init (deterministic, synthetic) and pure-JAX reference
# --------------------------------------------------------------------------
def init_params(key, *, ntoken, ninp, nhid, nlayers, attn_unit, hops, nfc, nclasses):
    keys = iter(jax.random.split(key, 64))

    def u(shape, scale):
        return jax.random.uniform(next(keys), shape, jnp.float32, -scale, scale)

    params = {"emb": u((ntoken, ninp), 0.1)}
    s = 1.0 / np.sqrt(nhid)
    gru = []
    for l in range(nlayers):
        isz = ninp if l == 0 else 2 * nhid
        gru.append(dict(
            wih=u((2, isz, 3 * nhid), s),     # [fwd, bwd], gate order (r, z, n)
            whh=u((2, nhid, 3 * nhid), s),
            bih=u((2, 1, 3 * nhid), s),
            bhh=u((2, 1, 3 * nhid), s),
        ))
    params["gru"] = gru
    params["ws1"] = u((2 * nhid, attn_unit), 1.0 / np.sqrt(2 * nhid))
    params["ws2"] = u((attn_unit, hops), 1.0 / np.sqrt(attn_unit))
    sc = 1.0 / np.sqrt(2 * nhid * hops)
    params["fcw"] = u((hops * 2 * nhid, nfc), sc)   # hop-major flattened fc weight
    params["fcb"] = u((1, nfc), sc)
    sp = 1.0 / np.sqrt(nfc)
    params["pw"] = u((nfc, nclasses), sp)
    params["pb"] = u((1, nclasses), sp)
    return params


def _gru_dir_ref(x, wih, whh, bih, bhh, reverse):
    # wih: (I, 3H), gate order (r, z, n)
    H = whh.shape[0]
    xs = x[::-1] if reverse else x

    def step(h, xt):
        gi = xt @ wih + bih
        gh = h @ whh + bhh
        r = jax.nn.sigmoid(gi[:, :H] + gh[:, :H])
        z = jax.nn.sigmoid(gi[:, H:2 * H] + gh[:, H:2 * H])
        n = jnp.tanh(gi[:, 2 * H:] + r * gh[:, 2 * H:])
        hn = (1 - z) * n + z * h
        return hn, hn

    h0 = jnp.zeros((x.shape[1], H), jnp.float32)
    _, ys = jax.lax.scan(step, h0, xs)
    return ys[::-1] if reverse else ys


def rnn_att_reference(tokens, params):
    emb = params["emb"][tokens]
    out = emb
    for layer in params["gru"]:
        f = _gru_dir_ref(out, layer["wih"][0], layer["whh"][0],
                         layer["bih"][0], layer["bhh"][0], reverse=False)
        b = _gru_dir_ref(out, layer["wih"][1], layer["whh"][1],
                         layer["bih"][1], layer["bhh"][1], reverse=True)
        out = jnp.concatenate([f, b], axis=-1)
    inp = jnp.transpose(out, (1, 0, 2))
    B = inp.shape[0]
    hbar = jnp.tanh(inp @ params["ws1"])
    alphas = jnp.transpose(hbar @ params["ws2"], (0, 2, 1))       # (B, hops, T)
    mask = (tokens.T == PAD_IDX).astype(jnp.float32)[:, None, :]
    a = jax.nn.softmax(alphas + (-10000.0) * mask, axis=-1)
    out_agg = jnp.einsum("bht,btd->bhd", a, inp)
    flat = out_agg.reshape(B, -1)
    fc = jnp.tanh(flat @ params["fcw"] + params["fcb"])
    pred = fc @ params["pw"] + params["pb"]
    return pred, a


if __name__ == "__main__":
    T, B = 16, 2
    NTOKEN, NINP, NHID, NLAYERS = 50, 16, 32, 2
    ATTN_UNIT, HOPS, NFC, NCLASSES = 16, 4, 32, 3

    key = jax.random.PRNGKey(0)
    kp, kt = jax.random.split(key)
    params = init_params(kp, ntoken=NTOKEN, ninp=NINP, nhid=NHID, nlayers=NLAYERS,
                         attn_unit=ATTN_UNIT, hops=HOPS, nfc=NFC, nclasses=NCLASSES)

    tokens = jax.random.randint(kt, (T, B), 1, NTOKEN, dtype=jnp.int32)
    tokens = tokens.at[12:, 0].set(PAD_IDX)   # some <pad> positions to exercise the mask
    tokens = tokens.at[10:, 1].set(PAD_IDX)

    pred, attn = rnn_att_forward(tokens, params)
    jax.block_until_ready((pred, attn))

    pred_ref, attn_ref = rnn_att_reference(tokens, params)
    # tolerance slightly widened (2e-3) to accommodate the approximate EUP
    # reciprocal used in the softmax normalization
    np.testing.assert_allclose(np.asarray(pred), np.asarray(pred_ref), rtol=2e-3, atol=2e-3)
    np.testing.assert_allclose(np.asarray(attn), np.asarray(attn_ref), rtol=2e-3, atol=2e-3)

    print("KERNEL_OK")
</pallas_src>

<mosaic_0001>
module attributes {stable_mosaic.version = 11 : i64} {
  func.func @kernel(%arg0: i32, %arg1: i32, %arg2: memref<1x8x2x16xf32, #tpu.memory_space<vmem>>, %arg3: memref<1x16x96xf32, #tpu.memory_space<vmem>>, %arg4: memref<1x32x96xf32, #tpu.memory_space<vmem>>, %arg5: memref<1x1x96xf32, #tpu.memory_space<vmem>>, %arg6: memref<1x1x96xf32, #tpu.memory_space<vmem>>, %arg7: memref<1x8x2x32xf32, #tpu.memory_space<vmem>>, %arg8: memref<2x32xf32, #tpu.memory_space<vmem>>) attributes {dimension_semantics = [#tpu.dimension_semantics<parallel>, #tpu.dimension_semantics<arbitrary>], iteration_bounds = array<i64: 2, 2>, scalar_prefetch = 0 : i64, scratch_operands = 1 : i64, tpu.core_type = #tpu.core_type<tc>, window_params = [{transform_indices = @transform_0, window_bounds = array<i64: 1, 8, 2, 16>}, {transform_indices = @transform_1, window_bounds = array<i64: 1, 16, 96>}, {transform_indices = @transform_2, window_bounds = array<i64: 1, 32, 96>}, {transform_indices = @transform_3, window_bounds = array<i64: 1, 1, 96>}, {transform_indices = @transform_4, window_bounds = array<i64: 1, 1, 96>}, {transform_indices = @transform_5, window_bounds = array<i64: 1, 8, 2, 32>}]} {
    %c0_i32 = arith.constant 0 : i32
    %0 = arith.cmpi eq, %arg1, %c0_i32 : i32
    %1 = arith.extui %0 : i1 to i32
    %c0_i32_0 = arith.constant 0 : i32
    %2 = arith.cmpi ne, %1, %c0_i32_0 : i32
    scf.if %2 {
      %cst_108 = arith.constant 0.000000e+00 : f32
      %341 = vector.broadcast %cst_108 : f32 to vector<2x32xf32>
      %c0_109 = arith.constant 0 : index
      %c0_110 = arith.constant 0 : index
      %342 = vector.load %arg8[%c0_109, %c0_110] : memref<2x32xf32, #tpu.memory_space<vmem>>, vector<2x32xf32>
      tpu.vector_store %arg8[%c0_109, %c0_110], %341 {strides = array<i32>} : memref<2x32xf32, #tpu.memory_space<vmem>>, vector<2x32xf32>,
    } else {
    }
    %c0 = arith.constant 0 : index
    %c0_1 = arith.constant 0 : index
    %c0_2 = arith.constant 0 : index
    %3 = vector.load %arg3[%c0, %c0_1, %c0_2] : memref<1x16x96xf32, #tpu.memory_space<vmem>>, vector<1x16x96xf32>
    %4 = vector.shape_cast %3 : vector<1x16x96xf32> to vector<16x96xf32>
    %c0_3 = arith.constant 0 : index
    %c0_4 = arith.constant 0 : index
    %c0_5 = arith.constant 0 : index
    %5 = vector.load %arg4[%c0_3, %c0_4, %c0_5] : memref<1x32x96xf32, #tpu.memory_space<vmem>>, vector<1x32x96xf32>
    %6 = vector.shape_cast %5 : vector<1x32x96xf32> to vector<32x96xf32>
    %c0_6 = arith.constant 0 : index
    %c0_7 = arith.constant 0 : index
    %c0_8 = arith.constant 0 : index
    %7 = vector.load %arg5[%c0_6, %c0_7, %c0_8] : memref<1x1x96xf32, #tpu.memory_space<vmem>>, vector<1x1x96xf32>
    %8 = vector.shape_cast %7 : vector<1x1x96xf32> to vector<1x96xf32>
    %c0_9 = arith.constant 0 : index
    %c0_10 = arith.constant 0 : index
    %c0_11 = arith.constant 0 : index
    %9 = vector.load %arg6[%c0_9, %c0_10, %c0_11] : memref<1x1x96xf32, #tpu.memory_space<vmem>>, vector<1x1x96xf32>
    %10 = vector.shape_cast %9 : vector<1x1x96xf32> to vector<1x96xf32>
    %c0_12 = arith.constant 0 : index
    %c0_13 = arith.constant 0 : index
    %11 = vector.load %arg8[%c0_12, %c0_13] : memref<2x32xf32, #tpu.memory_space<vmem>>, vector<2x32xf32>
    %c7_i32 = arith.constant 7 : i32
    %12 = arith.muli %arg0, %c7_i32 : i32
    %c0_i32_14 = arith.constant 0 : i32
    %13 = arith.addi %c0_i32_14, %12 : i32
    %c0_15 = arith.constant 0 : index
    %14 = arith.index_cast %13 : i32 to index
    %c0_16 = arith.constant 0 : index
    %c0_17 = arith.constant 0 : index
    %15 = vector.load %arg2[%c0_15, %14, %c0_16, %c0_17] : memref<1x8x2x16xf32, #tpu.memory_space<vmem>>, vector<1x1x2x16xf32>
    %16 = vector.shape_cast %15 : vector<1x1x2x16xf32> to vector<2x16xf32>
    %cst = arith.constant dense<0.000000e+00> : vector<2x96xf32>
    %17 = tpu.matmul %16, %4, %cst {dimension_numbers = #tpu.dot_dimension_numbers<[1], [0], [0], [1], [0, 0, 1, 1], [], []>} : vector<2x16xf32>, vector<16x96xf32>, vector<2x96xf32> -> vector<2x96xf32>
    %18 = vector.broadcast %8 : vector<1x96xf32> to vector<2x96xf32>
    %19 = arith.addf %17, %18 : vector<2x96xf32>
    %cst_18 = arith.constant dense<0.000000e+00> : vector<2x96xf32>
    %20 = tpu.matmul %11, %6, %cst_18 {dimension_numbers = #tpu.dot_dimension_numbers<[1], [0], [0], [1], [0, 0, 1, 1], [], []>} : vector<2x32xf32>, vector<32x96xf32>, vector<2x96xf32> -> vector<2x96xf32>
    %21 = vector.broadcast %10 : vector<1x96xf32> to vector<2x96xf32>
    %22 = arith.addf %20, %21 : vector<2x96xf32>
    %23 = vector.extract_strided_slice %19 {offsets = [0, 0], sizes = [2, 32], strides = [1, 1]} : vector<2x96xf32> to vector<2x32xf32>
    %24 = vector.extract_strided_slice %22 {offsets = [0, 0], sizes = [2, 32], strides = [1, 1]} : vector<2x96xf32> to vector<2x32xf32>
    %25 = arith.addf %23, %24 : vector<2x32xf32>
    %26 = arith.negf %25 : vector<2x32xf32>
    %27 = math.exp %26 : vector<2x32xf32>
    %cst_19 = arith.constant 1.000000e+00 : f32
    %28 = vector.broadcast %cst_19 : f32 to vector<2x32xf32>
    %29 = arith.addf %28, %27 : vector<2x32xf32>
    %30 = arith.divf %28, %29 : vector<2x32xf32>
    %31 = vector.extract_strided_slice %19 {offsets = [0, 32], sizes = [2, 32], strides = [1, 1]} : vector<2x96xf32> to vector<2x32xf32>
    %32 = vector.extract_strided_slice %22 {offsets = [0, 32], sizes = [2, 32], strides = [1, 1]} : vector<2x96xf32> to vector<2x32xf32>
    %33 = arith.addf %31, %32 : vector<2x32xf32>
    %34 = arith.negf %33 : vector<2x32xf32>
    %35 = math.exp %34 : vector<2x32xf32>
    %cst_20 = arith.constant 1.000000e+00 : f32
    %36 = vector.broadcast %cst_20 : f32 to vector<2x32xf32>
    %37 = arith.addf %36, %35 : vector<2x32xf32>
    %38 = arith.divf %36, %37 : vector<2x32xf32>
    %39 = vector.extract_strided_slice %19 {offsets = [0, 64], sizes = [2, 32], strides = [1, 1]} : vector<2x96xf32> to vector<2x32xf32>
    %40 = vector.extract_strided_slice %22 {offsets = [0, 64], sizes = [2, 32], strides = [1, 1]} : vector<2x96xf32> to vector<2x32xf32>
    %41 = arith.mulf %30, %40 : vector<2x32xf32>
    %42 = arith.addf %39, %41 : vector<2x32xf32>
    %43 = math.tanh %42 : vector<2x32xf32>
    %cst_21 = arith.constant 1.000000e+00 : f32
    %44 = vector.broadcast %cst_21 : f32 to vector<2x32xf32>
    %45 = arith.subf %44, %38 : vector<2x32xf32>
    %46 = arith.mulf %45, %43 : vector<2x32xf32>
    %47 = arith.mulf %38, %11 : vector<2x32xf32>
    %48 = arith.addf %46, %47 : vector<2x32xf32>
    %c0_22 = arith.constant 0 : index
    %49 = arith.index_cast %13 : i32 to index
    %c0_23 = arith.constant 0 : index
    %c0_24 = arith.constant 0 : index
    %50 = vector.load %arg7[%c0_22, %49, %c0_23, %c0_24] : memref<1x8x2x32xf32, #tpu.memory_space<vmem>>, vector<1x1x2x32xf32>
    %51 = vector.shape_cast %50 : vector<1x1x2x32xf32> to vector<2x32xf32>
    %52 = vector.shape_cast %48 : vector<2x32xf32> to vector<1x1x2x32xf32>
    tpu.vector_store %arg7[%c0_22, %49, %c0_23, %c0_24], %52 {strides = array<i32>} : memref<1x8x2x32xf32, #tpu.memory_space<vmem>>, vector<1x1x2x32xf32>,
    %c5_i32 = arith.constant 5 : i32
    %53 = arith.muli %arg0, %c5_i32 : i32
    %c1_i32 = arith.constant 1 : i32
    %54 = arith.addi %c1_i32, %53 : i32
    %c0_25 = arith.constant 0 : index
    %55 = arith.index_cast %54 : i32 to index
    %c0_26 = arith.constant 0 : index
    %c0_27 = arith.constant 0 : index
    %56 = vector.load %arg2[%c0_25, %55, %c0_26, %c0_27] : memref<1x8x2x16xf32, #tpu.memory_space<vmem>>, vector<1x1x2x16xf32>
    %57 = vector.shape_cast %56 : vector<1x1x2x16xf32> to vector<2x16xf32>
    %cst_28 = arith.constant dense<0.000000e+00> : vector<2x96xf32>
    %58 = tpu.matmul %57, %4, %cst_28 {dimension_numbers = #tpu.dot_dimension_numbers<[1], [0], [0], [1], [0, 0, 1, 1], [], []>} : vector<2x16xf32>, vector<16x96xf32>, vector<2x96xf32> -> vector<2x96xf32>
    %59 = vector.broadcast %8 : vector<1x96xf32> to vector<2x96xf32>
    %60 = arith.addf %58, %59 : vector<2x96xf32>
    %cst_29 = arith.constant dense<0.000000e+00> : vector<2x96xf32>
    %61 = tpu.matmul %48, %6, %cst_29 {dimension_numbers = #tpu.dot_dimension_numbers<[1], [0], [0], [1], [0, 0, 1, 1], [], []>} : vector<2x32xf32>, vector<32x96xf32>, vector<2x96xf32> -> vector<2x96xf32>
    %62 = vector.broadcast %10 : vector<1x96xf32> to vector<2x96xf32>
    %63 = arith.addf %61, %62 : vector<2x96xf32>
    %64 = vector.extract_strided_slice %60 {offsets = [0, 0], sizes = [2, 32], strides = [1, 1]} : vector<2x96xf32> to vector<2x32xf32>
    %65 = vector.extract_strided_slice %63 {offsets = [0, 0], sizes = [2, 32], strides = [1, 1]} : vector<2x96xf32> to vector<2x32xf32>
    %66 = arith.addf %64, %65 : vector<2x32xf32>
    %67 = arith.negf %66 : vector<2x32xf32>
    %68 = math.exp %67 : vector<2x32xf32>
    %cst_30 = arith.constant 1.000000e+00 : f32
    %69 = vector.broadcast %cst_30 : f32 to vector<2x32xf32>
    %70 = arith.addf %69, %68 : vector<2x32xf32>
    %71 = arith.divf %69, %70 : vector<2x32xf32>
    %72 = vector.extract_strided_slice %60 {offsets = [0, 32], sizes = [2, 32], strides = [1, 1]} : vector<2x96xf32> to vector<2x32xf32>
    %73 = vector.extract_strided_slice %63 {offsets = [0, 32], sizes = [2, 32], strides = [1, 1]} : vector<2x96xf32> to vector<2x32xf32>
    %74 = arith.addf %72, %73 : vector<2x32xf32>
    %75 = arith.negf %74 : vector<2x32xf32>
    %76 = math.exp %75 : vector<2x32xf32>
    %cst_31 = arith.constant 1.000000e+00 : f32
    %77 = vector.broadcast %cst_31 : f32 to vector<2x32xf32>
    %78 = arith.addf %77, %76 : vector<2x32xf32>
    %79 = arith.divf %77, %78 : vector<2x32xf32>
    %80 = vector.extract_strided_slice %60 {offsets = [0, 64], sizes = [2, 32], strides = [1, 1]} : vector<2x96xf32> to vector<2x32xf32>
    %81 = vector.extract_strided_slice %63 {offsets = [0, 64], sizes = [2, 32], strides = [1, 1]} : vector<2x96xf32> to vector<2x32xf32>
    %82 = arith.mulf %71, %81 : vector<2x32xf32>
    %83 = arith.addf %80, %82 : vector<2x32xf32>
    %84 = math.tanh %83 : vector<2x32xf32>
    %cst_32 = arith.constant 1.000000e+00 : f32
    %85 = vector.broadcast %cst_32 : f32 to vector<2x32xf32>
    %86 = arith.subf %85, %79 : vector<2x32xf32>
    %87 = arith.mulf %86, %84 : vector<2x32xf32>
    %88 = arith.mulf %79, %48 : vector<2x32xf32>
    %89 = arith.addf %87, %88 : vector<2x32xf32>
    %c0_33 = arith.constant 0 : index
    %90 = arith.index_cast %54 : i32 to index
    %c0_34 = arith.constant 0 : index
    %c0_35 = arith.constant 0 : index
    %91 = vector.load %arg7[%c0_33, %90, %c0_34, %c0_35] : memref<1x8x2x32xf32, #tpu.memory_space<vmem>>, vector<1x1x2x32xf32>
    %92 = vector.shape_cast %91 : vector<1x1x2x32xf32> to vector<2x32xf32>
    %93 = vector.shape_cast %89 : vector<2x32xf32> to vector<1x1x2x32xf32>
    tpu.vector_store %arg7[%c0_33, %90, %c0_34, %c0_35], %93 {strides = array<i32>} : memref<1x8x2x32xf32, #tpu.memory_space<vmem>>, vector<1x1x2x32xf32>,
    %c3_i32 = arith.constant 3 : i32
    %94 = arith.muli %arg0, %c3_i32 : i32
    %c2_i32 = arith.constant 2 : i32
    %95 = arith.addi %c2_i32, %94 : i32
    %c0_36 = arith.constant 0 : index
    %96 = arith.index_cast %95 : i32 to index
    %c0_37 = arith.constant 0 : index
    %c0_38 = arith.constant 0 : index
    %97 = vector.load %arg2[%c0_36, %96, %c0_37, %c0_38] : memref<1x8x2x16xf32, #tpu.memory_space<vmem>>, vector<1x1x2x16xf32>
    %98 = vector.shape_cast %97 : vector<1x1x2x16xf32> to vector<2x16xf32>
    %cst_39 = arith.constant dense<0.000000e+00> : vector<2x96xf32>
    %99 = tpu.matmul %98, %4, %cst_39 {dimension_numbers = #tpu.dot_dimension_numbers<[1], [0], [0], [1], [0, 0, 1, 1], [], []>} : vector<2x16xf32>, vector<16x96xf32>, vector<2x96xf32> -> vector<2x96xf32>
    %100 = vector.broadcast %8 : vector<1x96xf32> to vector<2x96xf32>
    %101 = arith.addf %99, %100 : vector<2x96xf32>
    %cst_40 = arith.constant dense<0.000000e+00> : vector<2x96xf32>
    %102 = tpu.matmul %89, %6, %cst_40 {dimension_numbers = #tpu.dot_dimension_numbers<[1], [0], [0], [1], [0, 0, 1, 1], [], []>} : vector<2x32xf32>, vector<32x96xf32>, vector<2x96xf32> -> vector<2x96xf32>
    %103 = vector.broadcast %10 : vector<1x96xf32> to vector<2x96xf32>
    %104 = arith.addf %102, %103 : vector<2x96xf32>
    %105 = vector.extract_strided_slice %101 {offsets = [0, 0], sizes = [2, 32], strides = [1, 1]} : vector<2x96xf32> to vector<2x32xf32>
    %106 = vector.extract_strided_slice %104 {offsets = [0, 0], sizes = [2, 32], strides = [1, 1]} : vector<2x96xf32> to vector<2x32xf32>
    %107 = arith.addf %105, %106 : vector<2x32xf32>
    %108 = arith.negf %107 : vector<2x32xf32>
    %109 = math.exp %108 : vector<2x32xf32>
    %cst_41 = arith.constant 1.000000e+00 : f32
    %110 = vector.broadcast %cst_41 : f32 to vector<2x32xf32>
    %111 = arith.addf %110, %109 : vector<2x32xf32>
    %112 = arith.divf %110, %111 : vector<2x32xf32>
    %113 = vector.extract_strided_slice %101 {offsets = [0, 32], sizes = [2, 32], strides = [1, 1]} : vector<2x96xf32> to vector<2x32xf32>
    %114 = vector.extract_strided_slice %104 {offsets = [0, 32], sizes = [2, 32], strides = [1, 1]} : vector<2x96xf32> to vector<2x32xf32>
    %115 = arith.addf %113, %114 : vector<2x32xf32>
    %116 = arith.negf %115 : vector<2x32xf32>
    %117 = math.exp %116 : vector<2x32xf32>
    %cst_42 = arith.constant 1.000000e+00 : f32
    %118 = vector.broadcast %cst_42 : f32 to vector<2x32xf32>
    %119 = arith.addf %118, %117 : vector<2x32xf32>
    %120 = arith.divf %118, %119 : vector<2x32xf32>
    %121 = vector.extract_strided_slice %101 {offsets = [0, 64], sizes = [2, 32], strides = [1, 1]} : vector<2x96xf32> to vector<2x32xf32>
    %122 = vector.extract_strided_slice %104 {offsets = [0, 64], sizes = [2, 32], strides = [1, 1]} : vector<2x96xf32> to vector<2x32xf32>
    %123 = arith.mulf %112, %122 : vector<2x32xf32>
    %124 = arith.addf %121, %123 : vector<2x32xf32>
    %125 = math.tanh %124 : vector<2x32xf32>
    %cst_43 = arith.constant 1.000000e+00 : f32
    %126 = vector.broadcast %cst_43 : f32 to vector<2x32xf32>
    %127 = arith.subf %126, %120 : vector<2x32xf32>
    %128 = arith.mulf %127, %125 : vector<2x32xf32>
    %129 = arith.mulf %120, %89 : vector<2x32xf32>
    %130 = arith.addf %128, %129 : vector<2x32xf32>
    %c0_44 = arith.constant 0 : index
    %131 = arith.index_cast %95 : i32 to index
    %c0_45 = arith.constant 0 : index
    %c0_46 = arith.constant 0 : index
    %132 = vector.load %arg7[%c0_44, %131, %c0_45, %c0_46] : memref<1x8x2x32xf32, #tpu.memory_space<vmem>>, vector<1x1x2x32xf32>
    %133 = vector.shape_cast %132 : vector<1x1x2x32xf32> to vector<2x32xf32>
    %134 = vector.shape_cast %130 : vector<2x32xf32> to vector<1x1x2x32xf32>
    tpu.vector_store %arg7[%c0_44, %131, %c0_45, %c0_46], %134 {strides = array<i32>} : memref<1x8x2x32xf32, #tpu.memory_space<vmem>>, vector<1x1x2x32xf32>,
    %c1_i32_47 = arith.constant 1 : i32
    %135 = arith.muli %arg0, %c1_i32_47 : i32
    %c3_i32_48 = arith.constant 3 : i32
    %136 = arith.addi %c3_i32_48, %135 : i32
    %c0_49 = arith.constant 0 : index
    %137 = arith.index_cast %136 : i32 to index
    %c0_50 = arith.constant 0 : index
    %c0_51 = arith.constant 0 : index
    %138 = vector.load %arg2[%c0_49, %137, %c0_50, %c0_51] : memref<1x8x2x16xf32, #tpu.memory_space<vmem>>, vector<1x1x2x16xf32>
    %139 = vector.shape_cast %138 : vector<1x1x2x16xf32> to vector<2x16xf32>
    %cst_52 = arith.constant dense<0.000000e+00> : vector<2x96xf32>
    %140 = tpu.matmul %139, %4, %cst_52 {dimension_numbers = #tpu.dot_dimension_numbers<[1], [0], [0], [1], [0, 0, 1, 1], [], []>} : vector<2x16xf32>, vector<16x96xf32>, vector<2x96xf32> -> vector<2x96xf32>
    %141 = vector.broadcast %8 : vector<1x96xf32> to vector<2x96xf32>
    %142 = arith.addf %140, %141 : vector<2x96xf32>
    %cst_53 = arith.constant dense<0.000000e+00> : vector<2x96xf32>
    %143 = tpu.matmul %130, %6, %cst_53 {dimension_numbers = #tpu.dot_dimension_numbers<[1], [0], [0], [1], [0, 0, 1, 1], [], []>} : vector<2x32xf32>, vector<32x96xf32>, vector<2x96xf32> -> vector<2x96xf32>
    %144 = vector.broadcast %10 : vector<1x96xf32> to vector<2x96xf32>
    %145 = arith.addf %143, %144 : vector<2x96xf32>
    %146 = vector.extract_strided_slice %142 {offsets = [0, 0], sizes = [2, 32], strides = [1, 1]} : vector<2x96xf32> to vector<2x32xf32>
    %147 = vector.extract_strided_slice %145 {offsets = [0, 0], sizes = [2, 32], strides = [1, 1]} : vector<2x96xf32> to vector<2x32xf32>
    %148 = arith.addf %146, %147 : vector<2x32xf32>
    %149 = arith.negf %148 : vector<2x32xf32>
    %150 = math.exp %149 : vector<2x32xf32>
    %cst_54 = arith.constant 1.000000e+00 : f32
    %151 = vector.broadcast %cst_54 : f32 to vector<2x32xf32>
    %152 = arith.addf %151, %150 : vector<2x32xf32>
    %153 = arith.divf %151, %152 : vector<2x32xf32>
    %154 = vector.extract_strided_slice %142 {offsets = [0, 32], sizes = [2, 32], strides = [1, 1]} : vector<2x96xf32> to vector<2x32xf32>
    %155 = vector.extract_strided_slice %145 {offsets = [0, 32], sizes = [2, 32], strides = [1, 1]} : vector<2x96xf32> to vector<2x32xf32>
    %156 = arith.addf %154, %155 : vector<2x32xf32>
    %157 = arith.negf %156 : vector<2x32xf32>
    %158 = math.exp %157 : vector<2x32xf32>
    %cst_55 = arith.constant 1.000000e+00 : f32
    %159 = vector.broadcast %cst_55 : f32 to vector<2x32xf32>
    %160 = arith.addf %159, %158 : vector<2x32xf32>
    %161 = arith.divf %159, %160 : vector<2x32xf32>
    %162 = vector.extract_strided_slice %142 {offsets = [0, 64], sizes = [2, 32], strides = [1, 1]} : vector<2x96xf32> to vector<2x32xf32>
    %163 = vector.extract_strided_slice %145 {offsets = [0, 64], sizes = [2, 32], strides = [1, 1]} : vector<2x96xf32> to vector<2x32xf32>
    %164 = arith.mulf %153, %163 : vector<2x32xf32>
    %165 = arith.addf %162, %164 : vector<2x32xf32>
    %166 = math.tanh %165 : vector<2x32xf32>
    %cst_56 = arith.constant 1.000000e+00 : f32
    %167 = vector.broadcast %cst_56 : f32 to vector<2x32xf32>
    %168 = arith.subf %167, %161 : vector<2x32xf32>
    %169 = arith.mulf %168, %166 : vector<2x32xf32>
    %170 = arith.mulf %161, %130 : vector<2x32xf32>
    %171 = arith.addf %169, %170 : vector<2x32xf32>
    %c0_57 = arith.constant 0 : index
    %172 = arith.index_cast %136 : i32 to index
    %c0_58 = arith.constant 0 : index
    %c0_59 = arith.constant 0 : index
    %173 = vector.load %arg7[%c0_57, %172, %c0_58, %c0_59] : memref<1x8x2x32xf32, #tpu.memory_space<vmem>>, vector<1x1x2x32xf32>
    %174 = vector.shape_cast %173 : vector<1x1x2x32xf32> to vector<2x32xf32>
    %175 = vector.shape_cast %171 : vector<2x32xf32> to vector<1x1x2x32xf32>
    tpu.vector_store %arg7[%c0_57, %172, %c0_58, %c0_59], %175 {strides = array<i32>} : memref<1x8x2x32xf32, #tpu.memory_space<vmem>>, vector<1x1x2x32xf32>,
    %c-1_i32 = arith.constant -1 : i32
    %176 = arith.muli %arg0, %c-1_i32 : i32
    %c4_i32 = arith.constant 4 : i32
    %177 = arith.addi %c4_i32, %176 : i32
    %c0_60 = arith.constant 0 : index
    %178 = arith.index_cast %177 : i32 to index
    %c0_61 = arith.constant 0 : index
    %c0_62 = arith.constant 0 : index
    %179 = vector.load %arg2[%c0_60, %178, %c0_61, %c0_62] : memref<1x8x2x16xf32, #tpu.memory_space<vmem>>, vector<1x1x2x16xf32>
    %180 = vector.shape_cast %179 : vector<1x1x2x16xf32> to vector<2x16xf32>
    %cst_63 = arith.constant dense<0.000000e+00> : vector<2x96xf32>
    %181 = tpu.matmul %180, %4, %cst_63 {dimension_numbers = #tpu.dot_dimension_numbers<[1], [0], [0], [1], [0, 0, 1, 1], [], []>} : vector<2x16xf32>, vector<16x96xf32>, vector<2x96xf32> -> vector<2x96xf32>
    %182 = vector.broadcast %8 : vector<1x96xf32> to vector<2x96xf32>
    %183 = arith.addf %181, %182 : vector<2x96xf32>
    %cst_64 = arith.constant dense<0.000000e+00> : vector<2x96xf32>
    %184 = tpu.matmul %171, %6, %cst_64 {dimension_numbers = #tpu.dot_dimension_numbers<[1], [0], [0], [1], [0, 0, 1, 1], [], []>} : vector<2x32xf32>, vector<32x96xf32>, vector<2x96xf32> -> vector<2x96xf32>
    %185 = vector.broadcast %10 : vector<1x96xf32> to vector<2x96xf32>
    %186 = arith.addf %184, %185 : vector<2x96xf32>
    %187 = vector.extract_strided_slice %183 {offsets = [0, 0], sizes = [2, 32], strides = [1, 1]} : vector<2x96xf32> to vector<2x32xf32>
    %188 = vector.extract_strided_slice %186 {offsets = [0, 0], sizes = [2, 32], strides = [1, 1]} : vector<2x96xf32> to vector<2x32xf32>
    %189 = arith.addf %187, %188 : vector<2x32xf32>
    %190 = arith.negf %189 : vector<2x32xf32>
    %191 = math.exp %190 : vector<2x32xf32>
    %cst_65 = arith.constant 1.000000e+00 : f32
    %192 = vector.broadcast %cst_65 : f32 to vector<2x32xf32>
    %193 = arith.addf %192, %191 : vector<2x32xf32>
    %194 = arith.divf %192, %193 : vector<2x32xf32>
    %195 = vector.extract_strided_slice %183 {offsets = [0, 32], sizes = [2, 32], strides = [1, 1]} : vector<2x96xf32> to vector<2x32xf32>
    %196 = vector.extract_strided_slice %186 {offsets = [0, 32], sizes = [2, 32], strides = [1, 1]} : vector<2x96xf32> to vector<2x32xf32>
    %197 = arith.addf %195, %196 : vector<2x32xf32>
    %198 = arith.negf %197 : vector<2x32xf32>
    %199 = math.exp %198 : vector<2x32xf32>
    %cst_66 = arith.constant 1.000000e+00 : f32
    %200 = vector.broadcast %cst_66 : f32 to vector<2x32xf32>
    %201 = arith.addf %200, %199 : vector<2x32xf32>
    %202 = arith.divf %200, %201 : vector<2x32xf32>
    %203 = vector.extract_strided_slice %183 {offsets = [0, 64], sizes = [2, 32], strides = [1, 1]} : vector<2x96xf32> to vector<2x32xf32>
    %204 = vector.extract_strided_slice %186 {offsets = [0, 64], sizes = [2, 32], strides = [1, 1]} : vector<2x96xf32> to vector<2x32xf32>
    %205 = arith.mulf %194, %204 : vector<2x32xf32>
    %206 = arith.addf %203, %205 : vector<2x32xf32>
    %207 = math.tanh %206 : vector<2x32xf32>
    %cst_67 = arith.constant 1.000000e+00 : f32
    %208 = vector.broadcast %cst_67 : f32 to vector<2x32xf32>
    %209 = arith.subf %208, %202 : vector<2x32xf32>
    %210 = arith.mulf %209, %207 : vector<2x32xf32>
    %211 = arith.mulf %202, %171 : vector<2x32xf32>
    %212 = arith.addf %210, %211 : vector<2x32xf32>
    %c0_68 = arith.constant 0 : index
    %213 = arith.index_cast %177 : i32 to index
    %c0_69 = arith.constant 0 : index
    %c0_70 = arith.constant 0 : index
    %214 = vector.load %arg7[%c0_68, %213, %c0_69, %c0_70] : memref<1x8x2x32xf32, #tpu.memory_space<vmem>>, vector<1x1x2x32xf32>
    %215 = vector.shape_cast %214 : vector<1x1x2x32xf32> to vector<2x32xf32>
    %216 = vector.shape_cast %212 : vector<2x32xf32> to vector<1x1x2x32xf32>
    tpu.vector_store %arg7[%c0_68, %213, %c0_69, %c0_70], %216 {strides = array<i32>} : memref<1x8x2x32xf32, #tpu.memory_space<vmem>>, vector<1x1x2x32xf32>,
    %c-3_i32 = arith.constant -3 : i32
    %217 = arith.muli %arg0, %c-3_i32 : i32
    %c5_i32_71 = arith.constant 5 : i32
    %218 = arith.addi %c5_i32_71, %217 : i32
    %c0_72 = arith.constant 0 : index
    %219 = arith.index_cast %218 : i32 to index
    %c0_73 = arith.constant 0 : index
    %c0_74 = arith.constant 0 : index
    %220 = vector.load %arg2[%c0_72, %219, %c0_73, %c0_74] : memref<1x8x2x16xf32, #tpu.memory_space<vmem>>, vector<1x1x2x16xf32>
    %221 = vector.shape_cast %220 : vector<1x1x2x16xf32> to vector<2x16xf32>
    %cst_75 = arith.constant dense<0.000000e+00> : vector<2x96xf32>
    %222 = tpu.matmul %221, %4, %cst_75 {dimension_numbers = #tpu.dot_dimension_numbers<[1], [0], [0], [1], [0, 0, 1, 1], [], []>} : vector<2x16xf32>, vector<16x96xf32>, vector<2x96xf32> -> vector<2x96xf32>
    %223 = vector.broadcast %8 : vector<1x96xf32> to vector<2x96xf32>
    %224 = arith.addf %222, %223 : vector<2x96xf32>
    %cst_76 = arith.constant dense<0.000000e+00> : vector<2x96xf32>
    %225 = tpu.matmul %212, %6, %cst_76 {dimension_numbers = #tpu.dot_dimension_numbers<[1], [0], [0], [1], [0, 0, 1, 1], [], []>} : vector<2x32xf32>, vector<32x96xf32>, vector<2x96xf32> -> vector<2x96xf32>
    %226 = vector.broadcast %10 : vector<1x96xf32> to vector<2x96xf32>
    %227 = arith.addf %225, %226 : vector<2x96xf32>
    %228 = vector.extract_strided_slice %224 {offsets = [0, 0], sizes = [2, 32], strides = [1, 1]} : vector<2x96xf32> to vector<2x32xf32>
    %229 = vector.extract_strided_slice %227 {offsets = [0, 0], sizes = [2, 32], strides = [1, 1]} : vector<2x96xf32> to vector<2x32xf32>
    %230 = arith.addf %228, %229 : vector<2x32xf32>
    %231 = arith.negf %230 : vector<2x32xf32>
    %232 = math.exp %231 : vector<2x32xf32>
    %cst_77 = arith.constant 1.000000e+00 : f32
    %233 = vector.broadcast %cst_77 : f32 to vector<2x32xf32>
    %234 = arith.addf %233, %232 : vector<2x32xf32>
    %235 = arith.divf %233, %234 : vector<2x32xf32>
    %236 = vector.extract_strided_slice %224 {offsets = [0, 32], sizes = [2, 32], strides = [1, 1]} : vector<2x96xf32> to vector<2x32xf32>
    %237 = vector.extract_strided_slice %227 {offsets = [0, 32], sizes = [2, 32], strides = [1, 1]} : vector<2x96xf32> to vector<2x32xf32>
    %238 = arith.addf %236, %237 : vector<2x32xf32>
    %239 = arith.negf %238 : vector<2x32xf32>
    %240 = math.exp %239 : vector<2x32xf32>
    %cst_78 = arith.constant 1.000000e+00 : f32
    %241 = vector.broadcast %cst_78 : f32 to vector<2x32xf32>
    %242 = arith.addf %241, %240 : vector<2x32xf32>
    %243 = arith.divf %241, %242 : vector<2x32xf32>
    %244 = vector.extract_strided_slice %224 {offsets = [0, 64], sizes = [2, 32], strides = [1, 1]} : vector<2x96xf32> to vector<2x32xf32>
    %245 = vector.extract_strided_slice %227 {offsets = [0, 64], sizes = [2, 32], strides = [1, 1]} : vector<2x96xf32> to vector<2x32xf32>
    %246 = arith.mulf %235, %245 : vector<2x32xf32>
    %247 = arith.addf %244, %246 : vector<2x32xf32>
    %248 = math.tanh %247 : vector<2x32xf32>
    %cst_79 = arith.constant 1.000000e+00 : f32
    %249 = vector.broadcast %cst_79 : f32 to vector<2x32xf32>
    %250 = arith.subf %249, %243 : vector<2x32xf32>
    %251 = arith.mulf %250, %248 : vector<2x32xf32>
    %252 = arith.mulf %243, %212 : vector<2x32xf32>
    %253 = arith.addf %251, %252 : vector<2x32xf32>
    %c0_80 = arith.constant 0 : index
    %254 = arith.index_cast %218 : i32 to index
    %c0_81 = arith.constant 0 : index
    %c0_82 = arith.constant 0 : index
    %255 = vector.load %arg7[%c0_80, %254, %c0_81, %c0_82] : memref<1x8x2x32xf32, #tpu.memory_space<vmem>>, vector<1x1x2x32xf32>
    %256 = vector.shape_cast %255 : vector<1x1x2x32xf32> to vector<2x32xf32>
    %257 = vector.shape_cast %253 : vector<2x32xf32> to vector<1x1x2x32xf32>
    tpu.vector_store %arg7[%c0_80, %254, %c0_81, %c0_82], %257 {strides = array<i32>} : memref<1x8x2x32xf32, #tpu.memory_space<vmem>>, vector<1x1x2x32xf32>,
    %c-5_i32 = arith.constant -5 : i32
    %258 = arith.muli %arg0, %c-5_i32 : i32
    %c6_i32 = arith.constant 6 : i32
    %259 = arith.addi %c6_i32, %258 : i32
    %c0_83 = arith.constant 0 : index
    %260 = arith.index_cast %259 : i32 to index
    %c0_84 = arith.constant 0 : index
    %c0_85 = arith.constant 0 : index
    %261 = vector.load %arg2[%c0_83, %260, %c0_84, %c0_85] : memref<1x8x2x16xf32, #tpu.memory_space<vmem>>, vector<1x1x2x16xf32>
    %262 = vector.shape_cast %261 : vector<1x1x2x16xf32> to vector<2x16xf32>
    %cst_86 = arith.constant dense<0.000000e+00> : vector<2x96xf32>
    %263 = tpu.matmul %262, %4, %cst_86 {dimension_numbers = #tpu.dot_dimension_numbers<[1], [0], [0], [1], [0, 0, 1, 1], [], []>} : vector<2x16xf32>, vector<16x96xf32>, vector<2x96xf32> -> vector<2x96xf32>
    %264 = vector.broadcast %8 : vector<1x96xf32> to vector<2x96xf32>
    %265 = arith.addf %263, %264 : vector<2x96xf32>
    %cst_87 = arith.constant dense<0.000000e+00> : vector<2x96xf32>
    %266 = tpu.matmul %253, %6, %cst_87 {dimension_numbers = #tpu.dot_dimension_numbers<[1], [0], [0], [1], [0, 0, 1, 1], [], []>} : vector<2x32xf32>, vector<32x96xf32>, vector<2x96xf32> -> vector<2x96xf32>
    %267 = vector.broadcast %10 : vector<1x96xf32> to vector<2x96xf32>
    %268 = arith.addf %266, %267 : vector<2x96xf32>
    %269 = vector.extract_strided_slice %265 {offsets = [0, 0], sizes = [2, 32], strides = [1, 1]} : vector<2x96xf32> to vector<2x32xf32>
    %270 = vector.extract_strided_slice %268 {offsets = [0, 0], sizes = [2, 32], strides = [1, 1]} : vector<2x96xf32> to vector<2x32xf32>
    %271 = arith.addf %269, %270 : vector<2x32xf32>
    %272 = arith.negf %271 : vector<2x32xf32>
    %273 = math.exp %272 : vector<2x32xf32>
    %cst_88 = arith.constant 1.000000e+00 : f32
    %274 = vector.broadcast %cst_88 : f32 to vector<2x32xf32>
    %275 = arith.addf %274, %273 : vector<2x32xf32>
    %276 = arith.divf %274, %275 : vector<2x32xf32>
    %277 = vector.extract_strided_slice %265 {offsets = [0, 32], sizes = [2, 32], strides = [1, 1]} : vector<2x96xf32> to vector<2x32xf32>
    %278 = vector.extract_strided_slice %268 {offsets = [0, 32], sizes = [2, 32], strides = [1, 1]} : vector<2x96xf32> to vector<2x32xf32>
    %279 = arith.addf %277, %278 : vector<2x32xf32>
    %280 = arith.negf %279 : vector<2x32xf32>
    %281 = math.exp %280 : vector<2x32xf32>
    %cst_89 = arith.constant 1.000000e+00 : f32
    %282 = vector.broadcast %cst_89 : f32 to vector<2x32xf32>
    %283 = arith.addf %282, %281 : vector<2x32xf32>
    %284 = arith.divf %282, %283 : vector<2x32xf32>
    %285 = vector.extract_strided_slice %265 {offsets = [0, 64], sizes = [2, 32], strides = [1, 1]} : vector<2x96xf32> to vector<2x32xf32>
    %286 = vector.extract_strided_slice %268 {offsets = [0, 64], sizes = [2, 32], strides = [1, 1]} : vector<2x96xf32> to vector<2x32xf32>
    %287 = arith.mulf %276, %286 : vector<2x32xf32>
    %288 = arith.addf %285, %287 : vector<2x32xf32>
    %289 = math.tanh %288 : vector<2x32xf32>
    %cst_90 = arith.constant 1.000000e+00 : f32
    %290 = vector.broadcast %cst_90 : f32 to vector<2x32xf32>
    %291 = arith.subf %290, %284 : vector<2x32xf32>
    %292 = arith.mulf %291, %289 : vector<2x32xf32>
    %293 = arith.mulf %284, %253 : vector<2x32xf32>
    %294 = arith.addf %292, %293 : vector<2x32xf32>
    %c0_91 = arith.constant 0 : index
    %295 = arith.index_cast %259 : i32 to index
    %c0_92 = arith.constant 0 : index
    %c0_93 = arith.constant 0 : index
    %296 = vector.load %arg7[%c0_91, %295, %c0_92, %c0_93] : memref<1x8x2x32xf32, #tpu.memory_space<vmem>>, vector<1x1x2x32xf32>
    %297 = vector.shape_cast %296 : vector<1x1x2x32xf32> to vector<2x32xf32>
    %298 = vector.shape_cast %294 : vector<2x32xf32> to vector<1x1x2x32xf32>
    tpu.vector_store %arg7[%c0_91, %295, %c0_92, %c0_93], %298 {strides = array<i32>} : memref<1x8x2x32xf32, #tpu.memory_space<vmem>>, vector<1x1x2x32xf32>,
    %c-7_i32 = arith.constant -7 : i32
    %299 = arith.muli %arg0, %c-7_i32 : i32
    %c7_i32_94 = arith.constant 7 : i32
    %300 = arith.addi %c7_i32_94, %299 : i32
    %c0_95 = arith.constant 0 : index
    %301 = arith.index_cast %300 : i32 to index
    %c0_96 = arith.constant 0 : index
    %c0_97 = arith.constant 0 : index
    %302 = vector.load %arg2[%c0_95, %301, %c0_96, %c0_97] : memref<1x8x2x16xf32, #tpu.memory_space<vmem>>, vector<1x1x2x16xf32>
    %303 = vector.shape_cast %302 : vector<1x1x2x16xf32> to vector<2x16xf32>
    %cst_98 = arith.constant dense<0.000000e+00> : vector<2x96xf32>
    %304 = tpu.matmul %303, %4, %cst_98 {dimension_numbers = #tpu.dot_dimension_numbers<[1], [0], [0], [1], [0, 0, 1, 1], [], []>} : vector<2x16xf32>, vector<16x96xf32>, vector<2x96xf32> -> vector<2x96xf32>
    %305 = vector.broadcast %8 : vector<1x96xf32> to vector<2x96xf32>
    %306 = arith.addf %304, %305 : vector<2x96xf32>
    %cst_99 = arith.constant dense<0.000000e+00> : vector<2x96xf32>
    %307 = tpu.matmul %294, %6, %cst_99 {dimension_numbers = #tpu.dot_dimension_numbers<[1], [0], [0], [1], [0, 0, 1, 1], [], []>} : vector<2x32xf32>, vector<32x96xf32>, vector<2x96xf32> -> vector<2x96xf32>
    %308 = vector.broadcast %10 : vector<1x96xf32> to vector<2x96xf32>
    %309 = arith.addf %307, %308 : vector<2x96xf32>
    %310 = vector.extract_strided_slice %306 {offsets = [0, 0], sizes = [2, 32], strides = [1, 1]} : vector<2x96xf32> to vector<2x32xf32>
    %311 = vector.extract_strided_slice %309 {offsets = [0, 0], sizes = [2, 32], strides = [1, 1]} : vector<2x96xf32> to vector<2x32xf32>
    %312 = arith.addf %310, %311 : vector<2x32xf32>
    %313 = arith.negf %312 : vector<2x32xf32>
    %314 = math.exp %313 : vector<2x32xf32>
    %cst_100 = arith.constant 1.000000e+00 : f32
    %315 = vector.broadcast %cst_100 : f32 to vector<2x32xf32>
    %316 = arith.addf %315, %314 : vector<2x32xf32>
    %317 = arith.divf %315, %316 : vector<2x32xf32>
    %318 = vector.extract_strided_slice %306 {offsets = [0, 32], sizes = [2, 32], strides = [1, 1]} : vector<2x96xf32> to vector<2x32xf32>
    %319 = vector.extract_strided_slice %309 {offsets = [0, 32], sizes = [2, 32], strides = [1, 1]} : vector<2x96xf32> to vector<2x32xf32>
    %320 = arith.addf %318, %319 : vector<2x32xf32>
    %321 = arith.negf %320 : vector<2x32xf32>
    %322 = math.exp %321 : vector<2x32xf32>
    %cst_101 = arith.constant 1.000000e+00 : f32
    %323 = vector.broadcast %cst_101 : f32 to vector<2x32xf32>
    %324 = arith.addf %323, %322 : vector<2x32xf32>
    %325 = arith.divf %323, %324 : vector<2x32xf32>
    %326 = vector.extract_strided_slice %306 {offsets = [0, 64], sizes = [2, 32], strides = [1, 1]} : vector<2x96xf32> to vector<2x32xf32>
    %327 = vector.extract_strided_slice %309 {offsets = [0, 64], sizes = [2, 32], strides = [1, 1]} : vector<2x96xf32> to vector<2x32xf32>
    %328 = arith.mulf %317, %327 : vector<2x32xf32>
    %329 = arith.addf %326, %328 : vector<2x32xf32>
    %330 = math.tanh %329 : vector<2x32xf32>
    %cst_102 = arith.constant 1.000000e+00 : f32
    %331 = vector.broadcast %cst_102 : f32 to vector<2x32xf32>
    %332 = arith.subf %331, %325 : vector<2x32xf32>
    %333 = arith.mulf %332, %330 : vector<2x32xf32>
    %334 = arith.mulf %325, %294 : vector<2x32xf32>
    %335 = arith.addf %333, %334 : vector<2x32xf32>
    %c0_103 = arith.constant 0 : index
    %336 = arith.index_cast %300 : i32 to index
    %c0_104 = arith.constant 0 : index
    %c0_105 = arith.constant 0 : index
    %337 = vector.load %arg7[%c0_103, %336, %c0_104, %c0_105] : memref<1x8x2x32xf32, #tpu.memory_space<vmem>>, vector<1x1x2x32xf32>
    %338 = vector.shape_cast %337 : vector<1x1x2x32xf32> to vector<2x32xf32>
    %339 = vector.shape_cast %335 : vector<2x32xf32> to vector<1x1x2x32xf32>
    tpu.vector_store %arg7[%c0_103, %336, %c0_104, %c0_105], %339 {strides = array<i32>} : memref<1x8x2x32xf32, #tpu.memory_space<vmem>>, vector<1x1x2x32xf32>,
    %c0_106 = arith.constant 0 : index
    %c0_107 = arith.constant 0 : index
    %340 = vector.load %arg8[%c0_106, %c0_107] : memref<2x32xf32, #tpu.memory_space<vmem>>, vector<2x32xf32>
    tpu.vector_store %arg8[%c0_106, %c0_107], %335 {strides = array<i32>} : memref<2x32xf32, #tpu.memory_space<vmem>>, vector<2x32xf32>,
    return
  }
  func.func @transform_0(%arg0: i32, %arg1: i32) -> (i32, i32, i32, i32) {
    %c2_i32 = arith.constant 2 : i32
    %0 = arith.muli %c2_i32, %arg1 : i32
    %c1_i32 = arith.constant 1 : i32
    %1 = arith.subi %c1_i32, %0 : i32
    %2 = arith.muli %arg0, %1 : i32
    %3 = arith.addi %arg1, %2 : i32
    %c0_i32 = arith.constant 0 : i32
    %c0_i32_0 = arith.constant 0 : i32
    %c0_i32_1 = arith.constant 0 : i32
    %c0_i32_2 = arith.constant 0 : i32
    return %c0_i32, %3, %c0_i32_0, %c0_i32_1 : i32, i32, i32, i32
  }
  func.func @transform_1(%arg0: i32, %arg1: i32) -> (i32, i32, i32) {
    %c0_i32 = arith.constant 0 : i32
    %c0_i32_0 = arith.constant 0 : i32
    %c0_i32_1 = arith.constant 0 : i32
    return %arg0, %c0_i32, %c0_i32_0 : i32, i32, i32
  }
  func.func @transform_2(%arg0: i32, %arg1: i32) -> (i32, i32, i32) {
    %c0_i32 = arith.constant 0 : i32
    %c0_i32_0 = arith.constant 0 : i32
    %c0_i32_1 = arith.constant 0 : i32
    return %arg0, %c0_i32, %c0_i32_0 : i32, i32, i32
  }
  func.func @transform_3(%arg0: i32, %arg1: i32) -> (i32, i32, i32) {
    %c0_i32 = arith.constant 0 : i32
    %c0_i32_0 = arith.constant 0 : i32
    %c0_i32_1 = arith.constant 0 : i32
    return %arg0, %c0_i32, %c0_i32_0 : i32, i32, i32
  }
  func.func @transform_4(%arg0: i32, %arg1: i32) -> (i32, i32, i32) {
    %c0_i32 = arith.constant 0 : i32
    %c0_i32_0 = arith.constant 0 : i32
    %c0_i32_1 = arith.constant 0 : i32
    return %arg0, %c0_i32, %c0_i32_0 : i32, i32, i32
  }
  func.func @transform_5(%arg0: i32, %arg1: i32) -> (i32, i32, i32, i32) {
    %c2_i32 = arith.constant 2 : i32
    %0 = arith.muli %c2_i32, %arg1 : i32
    %c1_i32 = arith.constant 1 : i32
    %1 = arith.subi %c1_i32, %0 : i32
    %2 = arith.muli %arg0, %1 : i32
    %3 = arith.addi %arg1, %2 : i32
    %c0_i32 = arith.constant 0 : i32
    %c0_i32_0 = arith.constant 0 : i32
    %c0_i32_1 = arith.constant 0 : i32
    return %arg0, %3, %c0_i32, %c0_i32_0 : i32, i32, i32, i32
  }
}

</mosaic_0001>

<bundles_post_ra>
// kernel: tpu_custom_call.1
= control target key start
LH: loop header
LB: loop body
LE: loop exit
PB: predicated region body
PF: predicated region fallthrough
CT: control target
= control target key end

     0   :  { %s3516_s0 = inlined_call_operand.hbm [shape: f32[1,16,2,16], index: 0, kind: input, shape index: {}]   ;;  %s3517_s1 = inlined_call_operand.hbm [shape: f32[2,16,96], index: 1, kind: input, shape index: {}]   ;;  %s3518_s2 = inlined_call_operand.hbm [shape: f32[2,32,96], index: 2, kind: input, shape index: {}]   ;;  %s3519_s3 = inlined_call_operand.vmem [shape: f32[2,1,96], index: 3, kind: input, shape index: {}]   ;;  %s3520_s4 = inlined_call_operand.vmem [shape: f32[2,1,96], index: 4, kind: input, shape index: {}]   ;;  %s3521_s5 = inlined_call_operand.hbm [shape: f32[2,16,2,32], index: 5, kind: output, shape index: {}]  }
   0x1   :  { %3543 = sst [smem:[#allocation23_spill]] %s3516_s0 }
   0x2   :  { %3544 = sst [smem:[#allocation24_spill]] %s3517_s1 }
   0x3   :  { %3545 = sst [smem:[#allocation25_spill]] %s3519_s3 }
   0x4   :  { %3546 = sst [smem:[#allocation26_spill]] %s3520_s4 }
   0x5   :  { %3547 = sst [smem:[#allocation27_spill]] %s3521_s5 }
   0x6   :  { %10 = vsyncpa [#allocation4], 0 }
   0x7   :  { %12 = vsyncpa [#allocation4 + $0x1], 0 }
   0x8   :  { %13 = vsyncpa [#allocation7], 0 }
   0x9   :  { %15 = vsyncpa [#allocation7 + $0x1], 0 }
   0xa   :  { %16 = vsyncpa [#allocation5], 0 }
   0xb   :  { %18 = vsyncpa [#allocation5 + $0x1], 0  ;;  %s2872_s18 = smov 0   ;;  %s2874_s19 = smov 0  }
   0xc   :  { %s2876_s20 = smov 0   ;;  %s2878_s21 = smov 0  }
   0xd   :  { %s2880_s22 = smov 0   ;;  %s2882_s23 = smov 0  }
   0xe   :  { %s2884_s24 = smov 0   ;;  %s2886_s25 = smov 0  }
   0xf   :  { %s2888_s26 = smov 0   ;;  %s2890_s27 = smov 0  }
  0x10   :  { %s2892_s28 = smov 0   ;;  %s2894_s29 = smov 0  }
  0x11   :  { %s2896_s30 = smov 0   ;;  %s2898_s6 = smov 0  }
  0x12 LB: > { %3548 = sst [smem:[#allocation13_spill]] %s2789_s22  ;;  %s2941_s7 = sadd.s32 4294967295, %s2825_s6   ;;  %s2825_s6 = sphi %s2898_s6, %s24_s6   ;;  %s2821_s30 = sphi %s2896_s30, %s3608_s30   ;;  %s2817_s29 = sphi %s2894_s29, %s3598_s29   ;;  %s2813_s28 = sphi %s2892_s28, %s3607_s28   ;;  %s2809_s27 = sphi %s2890_s27, %s3597_s27   ;;  %s2805_s26 = sphi %s2888_s26, %s3596_s26   ;;  %s2801_s25 = sphi %s2886_s25, %s3606_s25   ;;  %s2797_s24 = sphi %s2884_s24, %s3605_s24   ;;  %s2793_s23 = sphi %s2882_s23, %s3604_s23   ;;  %s2789_s22 = sphi %s2880_s22, %s3603_s22   ;;  %s2785_s21 = sphi %s2878_s21, %s3593_s21   ;;  %s2781_s20 = sphi %s2876_s20, %s3602_s20   ;;  %s2777_s19 = sphi %s2874_s19, %s3601_s19   ;;  %s2773_s18 = sphi %s2872_s18, %s3600_s18  }
  0x13   : > { %3549 = sst [smem:[#allocation14_spill]] %s2805_s26  ;;  %p59_p0 = scmp.eq.s32.totalorder %s2825_s6, 0 }
  0x14   : > { %3550 = sst [smem:[#allocation15_spill]] %s2809_s27  ;;  %p65_p1 = scmp.eq.s32.totalorder %s2941_s7, 0 }
  0x15   : > { %3551 = sst [smem:[#allocation16_spill]] %s2813_s28  ;;  %p84_p2 = scmp.ne.s32.totalorder %s2793_s23, %s2789_s22 }
  0x16   : > { %3552 = sst [smem:[#allocation17_spill]] %s2817_s29  ;;  %p90_p3 = scmp.ne.s32.totalorder %s2789_s22, %s2785_s21 }
  0x17   : > { %p3534_p4 = scmp.lt.s32.totalorder %s2825_s6, 4  ;;  %p86_p5 = por %p84_p2, %p59_p0 }
  0x18   : > { %p2954_p6 = por %p90_p3, %p65_p1  ;;  %s253_s10 = sand.u32 1, %s2825_s6  }
  0x19   : > { %s255_s11 = sand.u32 1, %s2793_s23   ;;  %s2188_s13 = sshll.u32 %s2821_s30, 8 }
  0x1a   : > { %s3553_s9 = scalar_select %p2954_p6, 1, 0 }
  0x1b   : > { %s2116_s12 = sshll.u32 %s255_s11, 4  ;;  %s3555_s1 = sld [smem:[#allocation24_spill]] }
  0x1c   : > { %3554 = sst [smem:[#allocation18_spill]] %s3553_s9  ;;  %s257_s17 = scalar_lea.vmem [#allocation6], %s2116_s12 }
  0x1d   : > { %s264_s8 = sshll.u32 %s257_s17, 4  ;;  %p2966_p7 = pnand %p3534_p4, %p86_p5  ;;  %s265_s8 = int_to_ptr.vmem [resolvable:$true] %s264_s8 }
  0x1e   : > { %s2119_s5 = sshll.u32 %s255_s11, 5  ;;  %s2970_s27 = scalar_lea.sflag [#allocation7], %s253_s10 }
  0x1f   : > { %s3556_s21 = scalar_select %p2966_p7, 1, 0 }
  0x20   : > { %p3533_p8 = pneg %p2966_p7  ;;  %s2606_s4 = scalar_lea.vmem %s265_s8, 256 }
  0x21   : > { %s263_s16 = scalar_lea.hbm %s3555_s1, %s2188_s13  ;;  %p2607_p9 = scmp.ne.s32.totalorder %s265_s8, %s2606_s4 }
  0x22   : > { %s2827_s12 = smov [#allocation6]  }
  0x23   : > { %p2609_p10 = pnand %p2607_p9, %p3533_p8  ;;  %s2611_s13 = sshll.u32 %s2827_s12, 4  ;;  %s2612_s13 = int_to_ptr.vmem [resolvable:$false] %s2611_s13 }
  0x24   : > { %s2613_s14 = scalar_lea.vmem %s2612_s13, 512  ;;  %p2614_p12 = scmp.lt.s32.totalorder %s265_s8, %s2612_s13 }
  0x25   : > { %p2610_p11 = pneg %p2609_p10  ;;  %p2615_p13 = scmp.lt.s32.totalorder %s2613_s14, %s2606_s4 }
  0x27   : > { %p2616_p2 = por %p2615_p13, %p2614_p12 }
  0x29   : > { %p2617_p3 = pnand %p2616_p2, %p2610_p11 }
  0x2b   : > { %2620 = shalt.err (!%p2617_p3)
}
  0x2c   : > { %s3524_s11 = smov 128   ;;  %s3525_s10 = smov 8  }
  0x2d   : > { %2412 = dma.hbm_to_vmem [thread:$0]  (!%p2966_p7), %s263_s16, 256, %s265_s8, %s2970_s27, %s3524_s11, %s3524_s11, %s3525_s10  }
  0x2e   : > { %p2122_p5 = scmp.ge.s32.totalorder %s2825_s6, 1  ;;  %s278_s4 = scalar_lea.vmem [#allocation8], %s2119_s5 }
  0x2f   : > { %s2984_s15 = sshll.u32 %s278_s4, 4  ;;  %p305_p9 = scmp.lt.s32.totalorder %s2825_s6, 5  ;;  %s286_s15 = int_to_ptr.vmem [resolvable:$true] %s2984_s15 }
  0x30   : > { %s33_s13 = sadd.s32 1, %s2817_s29  ;;  %s36_s14 = sadd.s32 1, %s2821_s30 }
  0x31   : > { %p2987_p10 = pnand %p2122_p5, %p305_p9  ;;  %p34_p11 = scmp.ge.s32.totalorder %s33_s13, 2 }
  0x32   : > { %s2106_s8 = sshll.u32 %s2817_s29, 1  ;;  %s51_s16 = sadd.s32 1, %s2805_s26 }
  0x33   : > { %s3557_s17 = scalar_select %p2987_p10, 1, 0 }
  0x34   : > { %s41_s5 = ssub.s32 1, %s2106_s8  ;;  %s3610_s13 = smov (%p34_p11, %s33_s13), 0 }
  0x35   : > { %3558 = sst [smem:[#allocation19_spill]] %s3610_s13  ;;  %s3612_s14 = smov (!%p34_p11, %s36_s14), %s2821_s30 }
  0x36   : > { %s42_s4 = smul.u32 %s2821_s30, %s41_s5  ;;  %s2107_s11 = sshll.u32 %s3610_s13, 1 }
  0x37   : > { %p38_p12 = scmp.ge.s32.totalorder %s3612_s14, 2  ;;  %s45_s10 = ssub.s32 1, %s2107_s11 }
  0x38   : > { %s43_s12 = sadd.s32 %s2817_s29, %s42_s4  ;;  %p58_p13 = scmp.ne.s32.totalorder %s2805_s26, %s2801_s25 }
  0x39   : > { %s3614_s14 = smov (%p38_p12, %s3612_s14), 0  ;;  %p64_p3 = scmp.ne.s32.totalorder %s2801_s25, %s2797_s24 }
  0x3a   : > { %3559 = sst [smem:[#allocation20_spill]] %s3614_s14  ;;  %p3008_p2 = por %p59_p0, %p58_p13 }
  0x3b   : > { %s46_s11 = smul.u32 %s45_s10, %s3614_s14  ;;  %s74_s5 = ssub.s32 %s2821_s30, %s3614_s14 }
  0x3c   : > { %p3019_p5 = por %p65_p1, %p64_p3  ;;  %p75_p9 = scmp.eq.s32.totalorder %s74_s5, 0 }
  0x3d   : > { %s47_s1 = sadd.s32 %s46_s11, %s3610_s13  ;;  %s191_s29 = sadd.s32 1, %s2781_s20 }
  0x3e   : > { %s3561_s4 = scalar_select %p3019_p5, 1, 0 }
  0x3f   : > { %s48_s3 = ssub.s32 %s43_s12, %s47_s1  ;;  %p201_p0 = scmp.ne.s32.totalorder %s2781_s20, %s2777_s19 }
  0x40   : > { %p49_p11 = scmp.eq.s32.totalorder %s48_s3, 0  ;;  %s188_s28 = sor.u32 %s74_s5, %s48_s3 }
  0x41   : > { %s3562_s9 = sadd.s32 1, %s2793_s23  ;;  %p189_p12 = scmp.eq.s32.totalorder %s188_s28, 0 }
  0x42   : > { %s3030_s24 = scalar_select %p75_p9, %s2793_s23, %s3562_s9  }
  0x43   : > { %s3033_s10 = scalar_select %p49_p11, %s2805_s26, %s51_s16  }
  0x44   : > { %3563 = sst [smem:[#allocation21_spill]] %s3030_s24  ;;  %p202_p1 = scmp.eq.s32.totalorder %s2941_s7, 3 }
  0x45   : > { %3564 = sst [smem:[#allocation22_spill]] %s3033_s10  ;;  %p207_p13 = scmp.ne.s32.totalorder %s2777_s19, %s2773_s18 }
  0x46   : > { %s3565_s14 = sadd.s32 4294967294, %s2825_s6   ;;  %p3043_p8 = por %p202_p1, %p201_p0 }
  0x47   : > { %p208_p3 = scmp.eq.s32.totalorder %s3565_s14, 3  ;;  %s228_s3 = sand.u32 1, %s2805_s26  }
  0x48   : > { %s3041_s22 = scalar_select %p189_p12, %s2781_s20, %s191_s29  }
  0x49   : > { %s3566_s11 = scalar_select %p3043_p8, 1, 0 }
  0x4a   : > { %p3047_p4 = por %p208_p3, %p207_p13  ;;  %s2187_s9 = sshll.u32 %s43_s12, 8 }
  0x4b   : > { %s2112_s5 = sshll.u32 %s228_s3, 4  ;;  %s3568_s0 = sld [smem:[#allocation23_spill]] }
  0x4c   : > { %s3567_s1 = scalar_select %p3047_p4, 1, 0 }
  0x4d   : > { %s232_s29 = scalar_lea.vmem [#allocation3], %s2112_s5  ;;  %p3569_p9 = scmp.lt.s32.totalorder %s2825_s6, 4 }
  0x4e   : > { %s243_s14 = sshll.u32 %s232_s29, 4  ;;  %s3067_s12 = scalar_lea.sflag [#allocation4], %s228_s3  ;;  %s3065_s14 = int_to_ptr.vmem [resolvable:$true] %s243_s14 }
  0x4f   : > { %p3061_p0 = pnand %p3569_p9, %p3008_p2 }
  0x51   : > { %s3055_s28 = scalar_lea.hbm %s3568_s0, %s2187_s9  ;;  %p2623_p12 = pneg %p3061_p0 }
  0x52   : > { %s2621_s26 = scalar_lea.hbm %s3055_s28, 256  ;;  %s2626_s8 = scalar_lea.hbm %s3568_s0, 512 }
  0x53   : > { %p2622_p11 = scmp.ne.s32.totalorder %s3055_s28, %s2621_s26  ;;  %p2627_p2 = scmp.lt.s32.totalorder %s3055_s28, %s3568_s0 }
  0x54   : > { %p2628_p3 = scmp.lt.s32.totalorder %s2626_s8, %s2621_s26 }
  0x55   : > { %p2624_p1 = pnand %p2623_p12, %p2622_p11 }
  0x56   : > { %p2629_p9 = por %p2628_p3, %p2627_p2 }
  0x57   : > { %p2625_p13 = pneg %p2624_p1 }
  0x59   : > { %p2630_p4 = pnand %p2629_p9, %p2625_p13 }
  0x5b   : > { %2633 = shalt.err (!%p2630_p4)
}
  0x5c   : > { %s2634_s3 = scalar_lea.vmem %s3065_s14, 256  ;;  %s2830_s29 = smov [#allocation3]  }
  0x5d   : > { %p2635_p8 = scmp.ne.s32.totalorder %s3065_s14, %s2634_s3  ;;  %s2639_s24 = sshll.u32 %s2830_s29, 4  ;;  %s2640_s24 = int_to_ptr.vmem [resolvable:$false] %s2639_s24 }
  0x5e   : > { %s2641_s13 = scalar_lea.vmem %s2640_s24, 512  ;;  %p2642_p1 = scmp.lt.s32.totalorder %s3065_s14, %s2640_s24 }
  0x5f   : > { %p2637_p6 = pnand %p2635_p8, %p2623_p12  ;;  %p2643_p5 = scmp.lt.s32.totalorder %s2641_s13, %s2634_s3 }
  0x61   : > { %p2638_p11 = pneg %p2637_p6  ;;  %p2644_p10 = por %p2643_p5, %p2642_p1 }
  0x63   : > { %p2645_p7 = pnand %p2644_p10, %p2638_p11 }
  0x65   : > { %2648 = shalt.err (!%p2645_p7)
}
  0x66   : > { %s2831_s26 = smov 32   ;;  %s2832_s9 = smov 2  }
  0x67   : > { %2409 = dma.hbm_to_vmem [thread:$0]  (!%p3061_p0), %s3055_s28, 256, %s3065_s14, %s3067_s12, %s2831_s26, %s2831_s26, %s2832_s9  }
  0x68   : > { %s2189_s8 = sshll.u32 %s2821_s30, 9  ;;  %s2662_s3 = scalar_lea.vmem %s286_s15, 512 }
  0x69   : > { %s284_s24 = scalar_lea.hbm %s3518_s2, %s2189_s8  ;;  %p2663_p4 = scmp.ne.s32.totalorder %s286_s15, %s2662_s3 }
  0x6a   : > { %p3571_p6 = scmp.ne.s32.totalorder %s3556_s21, 0  ;;  %s2833_s29 = smov [#allocation8]  }
  0x6b   : > { %s2667_s13 = sshll.u32 %s2833_s29, 4  ;;  %s2668_s13 = int_to_ptr.vmem [resolvable:$false] %s2667_s13 }
  0x6c   : > { %p3572_p7 = pneg %p3571_p6  ;;  %s2669_s0 = scalar_lea.vmem %s2668_s13, 1024 }
  0x6d   : > { %p2670_p5 = scmp.lt.s32.totalorder %s286_s15, %s2668_s13  ;;  %p2671_p12 = scmp.lt.s32.totalorder %s2669_s0, %s2662_s3 }
  0x6e   : > { %p2665_p8 = pnand %p2663_p4, %p3572_p7 }
  0x6f   : > { %p2672_p13 = por %p2671_p12, %p2670_p5 }
  0x70   : > { %p2666_p10 = pneg %p2665_p8 }
  0x72   : > { %p2673_p0 = pnand %p2672_p13, %p2666_p10 }
  0x74   : > { %2676 = shalt.err (!%p2673_p0)
}
  0x75   : > { %s3573_s10 = smov 8   ;;  %s3574_s28 = smov 128  }
  0x76   : > { %2415 = dma.hbm_to_vmem [thread:$0]  (!%p3571_p6), %s284_s24, 512, %s286_s15, %s2970_s27, %s3574_s28, %s3574_s28, %s3573_s10  }
  0x77   : > { %p3575_p2 = scmp.ne.s32.totalorder %s3557_s17, 0 }
  0x78   : > { %s311_s14 = sand.u32 (!%p3575_p2), 1, %s2801_s25   ;;  %p3576_p3 = scmp.ne.s32.totalorder (!%p3575_p2), %s3561_s4, 0 }
  0x79   : > { %309 = sbr.rel (%p3575_p2) target bundleno = 5608 (0x15e8), region = 40  ;;  %s2123_s12 = sshll.u32 (!%p3575_p2), %s311_s14, 4 }
  0x7a   : > { %s312_s26 = scalar_lea.sflag (!%p3575_p2), [#allocation4], %s311_s14  ;;  %s3105_s9 = scalar_lea.vmem (!%p3575_p2), [#allocation3], %s2123_s12 }
  0x7e   : > { %2760 = dma.done.wait (%p3576_p3), %s312_s26, 256  }
  0x7f   : > { %2762 = vsyncadd (%p3576_p3), %s312_s26, 4294967040  ;;  %s3577_s0 = sld [smem:[#allocation13_spill]]  ;;  %s320_s8 = sand.u32 1, %s2941_s7  }
  0x80   : > { %s3578_s21 = sld [smem:[#allocation18_spill]]  ;;  %s321_s17 = scalar_lea.sflag [#allocation7], %s320_s8 }
  0x85   : > { %s322_s27 = sand.u32 1, %s3577_s0  }
  0x86   : > { %s2124_s15 = sshll.u32 %s322_s27, 4  ;;  %p3579_p9 = scmp.ne.s32.totalorder %s3578_s21, 0 }
  0x87   : > { %s324_s5 = scalar_lea.vmem [#allocation6], %s2124_s15 }
  0x88   : > { %2764 = dma.done.wait (%p3579_p9), %s321_s17, 768  }
  0x89   : > { %2766 = vsyncadd (%p3579_p9), %s321_s17, 4294966528  ;;  %s3580_s16 = sld [smem:[#allocation16_spill]]  ;;  %s2125_s24 = sshll.u32 %s322_s27, 5 }
  0x8a   : > { %s373_s4 = sand.u32 1, %s2777_s19   ;;  %s3581_s13 = sld [smem:[#allocation25_spill]] }
  0x8b   : > { %s2126_s3 = sshll.u32 %s373_s4, 4  ;;  %s3582_s12 = sld [smem:[#allocation26_spill]] }
  0x8c   : > { %s3132_s0 = scalar_lea.vmem [#allocation8], %s2125_s24  ;;  %s3134_s21 = scalar_lea.vmem [#allocation9], %s2126_s3 }
  0x8d   : > { %s3583_s8 = sld [smem:[#allocation15_spill]] }
  0x8f   : > { %p381_p11 = scmp.lt.s32.totalorder %s3580_s16, 1 }
  0x91   : > { %s3616_s16 = smov (!%p381_p11, %s3580_s16), 1 }
  0x92   : > { %s383_s10 = scalar_lea.vmem %s3581_s13, %s3616_s16  ;;  %s386_s26 = scalar_lea.vmem %s3582_s12, %s3616_s16 }
  0x93   : > { %p2127_p1 = scmp.ne.s32.totalorder %s3583_s8, 0 }
  0x95   : > { %395 = sbr.rel (%p2127_p1) target bundleno = 156 (0x9c), region = 56 }
  0x9a   : > { %vm396_vm0 = vcmask 254976   ;;  %v2834_v0 = vmov 0.0  }
  0x9b   : > { %397 = vst.msk [vmem:[#allocation2] sm:$0x3] %vm396_vm0, %v2834_v0 }
  0x9c PF: > { %v3137_v1 = vld [vmem:[%s324_s5 + $0x8] sm:$0xff]  ;;  %s3584_s27 = sld [smem:[#allocation16_spill]]  ;;  %v2835_v2 = vmov 0.0   ;;  %v3141_v3 = vld [vmem:[%s324_s5] sm:$0xff]  ;;  %vm2836_vm1 = vmmov 0   ;;  %vm417_vm2 = vcmask 130048  }
  0x9d   : > { %2254 = vmatprep.subr.mxu1 %v2835_v2  ;;  %2258 = vmatprep.mubr.msk.f32.mxu1 %vm2836_vm1, %v2835_v2  ;;  %v3152_v5 = vld [vmem:[%s3132_s0 + $0x18] sm:$0xff]  ;;  %v3160_v6 = vld [vmem:[%s3132_s0 + $0x10] sm:$0xff]  ;;  %v3167_v7 = vld [vmem:[%s3132_s0 + $0x8] sm:$0xff]  ;;  %vm497_vm3 = vcmask 261120   ;;  %s2837_s7 = smov 64   ;;  %s2838_s14 = smov 96  }
  0x9e   : > { %2255 = vmatpush3.msra.mxu1 %v3137_v1  ;;  %2272 = vmatprep.subr.mxu0 %v2835_v2  ;;  %v3175_v8 = vld [vmem:[%s3132_s0] sm:$0xff]  ;;  %v3194_v12 = vld [vmem:[%s386_s26] ss:$0 sm:$0xff]  ;;  %s3542_s12 = smov 32   ;;  %vm605_vm4 = vcmask 254976   ;;  %p3589_p6 = scmp.ne.s32.totalorder %s3566_s11, 0 }
  0x9f   : > { %2256 = vmatprep.subr.mxu1 %v2835_v2  ;;  %2273 = vmatpush3.msra.mxu0 %v3137_v1  ;;  %v3203_v16 = vld [vmem:[%s383_s10] ss:$0 sm:$0xff] }
  0xa0   : > { %2257 = vmatpush3.msra.mxu1 %v3141_v3  ;;  %2274 = vmatprep.subr.mxu0 %v2835_v2 }
  0xa1   : > { %2261 = vmatprep.subr.mxu1 %v2835_v2  ;;  %2275 = vmatpush3.msra.mxu0 %v3141_v3 }
  0xa2   : > { %s2128_s15 = smul.u32 14, %s3584_s27  ;;  %2276 = vmatprep.mubr.msk.f32.mxu0 %vm2836_vm1, %v2835_v2  ;;  %2279 = vmatprep.subr.mxu0 %v2835_v2  ;;  %v406_v9 = vld [vmem:[#allocation2] sm:$0x3]  ;;  %s1152_s3 = ssub.s32 4, %s3584_s27 }
  0xa3   : > { %s2134_s16 = smul.u32 10, %s3584_s27  ;;  %s3305_s29 = sshll.u32 %s1152_s3, 1 }
  0xa4   : > { %s409_s17 = scalar_lea.vmem %s3105_s9, %s2128_s15 [#allocation3]  ;;  %s604_s26 = scalar_lea.vmem %s3134_s21, %s2128_s15 [#allocation9] }
  0xa5   : > { %v410_v4 = vld [vmem:[%s409_s17] sm:$0x3]  ;;  %s1979_s10 = scalar_lea.vmem %s3105_s9, %s2134_s16 [#allocation3]  ;;  %s2141_s0 = smul.u32 6, %s3584_s27 }
  0xa6   : > { %2259 = vmatmul.mubr.msk.f32.vlgmr.msra.gmra.mxu1 %vm417_vm2, %v410_v4  ;;  %v2135_v27 = vld [vmem:[%s1979_s10 + $0x2] sm:$0x3]  ;;  %s1983_s15 = scalar_lea.vmem %s3134_s21, %s2134_s16 [#allocation9]  ;;  %s2148_s17 = sshll.u32 %s3584_s27, 1 }
  0xa7   : > { %2262 = vmatpush3.msra.mxu1 %v3152_v5  ;;  %2269 = vmatprep.mubr.msk.f32.mxu1 %vm2836_vm1, %v2835_v2  ;;  %s1987_s8 = scalar_lea.vmem %s3105_s9, %s2141_s0 [#allocation3]  ;;  %s1994_s5 = scalar_lea.vmem %s3105_s9, %s2148_s17 [#allocation3] }
  0xa8   : > { %2263 = vmatprep.subr.mxu1 %v2835_v2  ;;  %2277 = vmatmul.mubr.msk.f32.vlgmr.msra.gmra.mxu0 %vm417_vm2, %v2135_v27  ;;  %v2142_v51 = vld [vmem:[%s1987_s8 + $0x4] sm:$0x3]  ;;  %s1991_s24 = scalar_lea.vmem %s3134_s21, %s2141_s0 [#allocation9]  ;;  %s1154_s13 = scalar_lea.vmem %s3105_s9, %s3305_s29 [#allocation3] }
  0xa9   : > { %2264 = vmatpush3.msra.mxu1 %v3160_v6  ;;  %2280 = vmatpush3.msra.mxu0 %v3152_v5  ;;  %s1997_s28 = scalar_lea.vmem %s3134_s21, %s2148_s17 [#allocation9]  ;;  %s2159_s16 = smul.u32 4294967290, %s3584_s27 }
  0xaa   : > { %2265 = vmatprep.subr.mxu1 %v2835_v2  ;;  %2281 = vmatprep.subr.mxu0 %v2835_v2  ;;  %s2166_s0 = smul.u32 4294967286, %s3584_s27 }
  0xab   : > { %2266 = vmatpush3.msra.mxu1 %v3167_v7  ;;  %2287 = vmatprep.mubr.msk.f32.mxu0 %vm2836_vm1, %v2835_v2  ;;  %s2005_s10 = scalar_lea.vmem %s3105_s9, %s2159_s16 [#allocation3]  ;;  %s2173_s17 = smul.u32 4294967282, %s3584_s27 }
  0xac   : > { %2267 = vmatprep.subr.mxu1 %v2835_v2  ;;  %2282 = vmatpush3.msra.mxu0 %v3160_v6  ;;  %s2013_s8 = scalar_lea.vmem %s3105_s9, %s2166_s0 [#allocation3] }
  0xad   : > { %2268 = vmatpush3.msra.mxu1 %v3175_v8  ;;  %2283 = vmatprep.subr.mxu0 %v2835_v2 }
  0xae   : > { %2270 = vmatmul.mubr.msk.f32.vlgmr.msra.gmra.mxu1 %vm497_vm3, %v406_v9  ;;  %2290 = vmatprep.subr.mxu1 %v2835_v2 }
  0xaf   : > { %2291 = vmatpush3.msra.mxu1 %v3137_v1  ;;  %2294 = vmatprep.mubr.msk.f32.mxu1 %vm2836_vm1, %v2835_v2 }
  0xb0   : > { %2292 = vmatprep.subr.mxu1 %v2835_v2  ;;  %2284 = vmatpush3.msra.mxu0 %v3167_v7 }
  0xb1   : > { %2293 = vmatpush3.msra.mxu1 %v3141_v3  ;;  %2285 = vmatprep.subr.mxu0 %v2835_v2 }
  0xb2   : > { %2297 = vmatprep.subr.mxu1 %v2835_v2  ;;  %2286 = vmatpush3.msra.mxu0 %v3175_v8 }
  0xb3   : > { %2308 = vmatprep.subr.mxu0 %v2835_v2  ;;  %2295 = vmatmul.mubr.msk.f32.vlgmr.msra.gmra.mxu1 %vm417_vm2, %v2142_v51 }
  0xb4   : > { %2298 = vmatpush3.msra.mxu1 %v3152_v5  ;;  %2305 = vmatprep.mubr.msk.f32.mxu1 %vm2836_vm1, %v2835_v2 }
  0xb5   : > { %2299 = vmatprep.subr.mxu1 %v2835_v2 }
  0xb6   : > { %2300 = vmatpush3.msra.mxu1 %v3160_v6 }
  0xb7   : > { %2301 = vmatprep.subr.mxu1 %v2835_v2 }
  0xb8   : > { %2302 = vmatpush3.msra.mxu1 %v3167_v7 }
  0xb9   : > { %2303 = vmatprep.subr.mxu1 %v2835_v2 }
  0xba   : > { %2304 = vmatpush3.msra.mxu1 %v3175_v8 }
  0xbb   : > { %2326 = vmatprep.subr.mxu1 %v2835_v2 }
 0x166   : > { %v487_v10 = vpop.f32.mrf.mxu1 }
 0x167   : > { %v488_v17 = vadd.f32 %v3203_v16, %v487_v10 }
 0x168   : > { %v2260_v11 = vpop.f32.mrf.mxu1  ;;  %v681_v35 = vpop.f32.mrf.mxu0 }
 0x169   : > { %v682_v41 = vadd.f32 %v3203_v16, %v681_v35 }
 0x16a   : > { %v2278_v36 = vpop.f32.mrf.mxu0 }
 0x16e   : > { %v567_v13 = vpop.f32.mrf.mxu1 }
 0x16f   : > { %v568_v14 = vadd.f32 %v3194_v12, %v567_v13 }
 0x170   : > { %v2271_v15 = vpop.f32.mrf.mxu1 }
 0x171   : > { %579 = vrot.lane.b32.xlu0 %v568_v14, %s2837_s7  ;;  %v571_v18 = vadd.f32 %v568_v14, %v488_v17 }
 0x173   : > { %v2133_v19 = vmul.f32 -1.442695, %v571_v18  ;;  %v863_v58 = vpop.f32.mrf.mxu1 }
 0x174   : > { %v864_v0 = vadd.f32 %v3203_v16, %v863_v58 }
 0x175   : > { %2545 = vpow2.f32 %v2133_v19  ;;  %v2296_v59 = vpop.f32.mrf.mxu1  ;;  %v2149_v19 = vld [vmem:[%s1994_s5 + $0x6] sm:$0x3]  ;;  %s2021_s5 = scalar_lea.vmem %s3105_s9, %s2173_s17 [#allocation3]  ;;  %s2017_s9 = scalar_lea.vmem %s3134_s21, %s2166_s0 [#allocation9] }
 0x176   : > { %s1900_s0 = sshll.u32 %s3134_s21, 4  ;;  %s3433_s0 = int_to_ptr.vmem [resolvable:$true] %s1900_s0 }
 0x182   : > { %v2546_v20 = vpop.eup %2545 }
 0x183   : > { %v575_v21 = vadd.f32 1.0, %v2546_v20 }
 0x185   : > { %2547 = vrcp.f32 %v575_v21 }
 0x192   : > { %v2548_v22 = vpop.eup %2547 }
 0x193   : > { %v589_v30 = vsub.f32 1.0, %v2548_v22 }
 0x1e3   : > { %v580_v23 = vpop.permute.xlu0 %579 }
 0x1e4   : > { %v582_v24 = vmul.f32 %v2548_v22, %v580_v23 }
 0x1e6   : > { %584 = vrot.lane.b32.xlu0 %v582_v24, %s2837_s7 }
 0x258   : > { %v585_v25 = vpop.permute.xlu0 %584 }
 0x259   : > { %v587_v26 = vadd.f32 %v585_v25, %v488_v17 }
 0x25b   : > { %2549 = vtanh.f32 %v587_v26 }
 0x268   : > { %v2550_v28 = vpop.eup %2549 }
 0x269   : > { %591 = vrot.lane.b32.xlu1 %v2550_v28, %s2838_s14 }
 0x26d   : > { %595 = vrot.lane.b32.xlu1 %v406_v9, %s3542_s12 }
 0x2db   : > { %v592_v29 = vpop.permute.xlu1 %591 }
 0x2dc   : > { %v594_v32 = vmul.f32 %v592_v29, %v589_v30 }
 0x2df   : > { %v596_v31 = vpop.permute.xlu1 %595 }
 0x2e0   : > { %v598_v33 = vmul.f32 %v2548_v22, %v596_v31 }
 0x2e2   : > { %v599_v34 = vadd.f32 %v598_v33, %v594_v32 }
 0x2e4   : > { %601 = vrot.lane.b32.xlu0 %v599_v34, %s2838_s14 }
 0x356   : > { %v602_v37 = vpop.permute.xlu0 %601 }
 0x357   : > { %606 = vst.msk [vmem:[%s604_s26] sm:$0x3] %vm605_vm4, %v602_v37  ;;  %2288 = vmatmul.mubr.msk.f32.vlgmr.msra.gmra.mxu0 %vm497_vm3, %v602_v37  ;;  %s1331_s26 = scalar_lea.vmem %s3134_s21, %s3305_s29 [#allocation9] }
 0x358   : > { %2309 = vmatpush3.msra.mxu0 %v3137_v1  ;;  %2312 = vmatprep.mubr.msk.f32.mxu0 %vm2836_vm1, %v2835_v2 }
 0x359   : > { %2310 = vmatprep.subr.mxu0 %v2835_v2 }
 0x35a   : > { %2311 = vmatpush3.msra.mxu0 %v3141_v3 }
 0x35b   : > { %2315 = vmatprep.subr.mxu0 %v2835_v2  ;;  %2313 = vmatmul.mubr.msk.f32.vlgmr.msra.gmra.mxu0 %vm417_vm2, %v2149_v19 }
 0x35c   : > { %2316 = vmatpush3.msra.mxu0 %v3152_v5  ;;  %2323 = vmatprep.mubr.msk.f32.mxu0 %vm2836_vm1, %v2835_v2 }
 0x35d   : > { %2317 = vmatprep.subr.mxu0 %v2835_v2 }
 0x35e   : > { %2318 = vmatpush3.msra.mxu0 %v3160_v6 }
 0x35f   : > { %2319 = vmatprep.subr.mxu0 %v2835_v2 }
 0x360   : > { %2320 = vmatpush3.msra.mxu0 %v3167_v7 }
 0x361   : > { %2321 = vmatprep.subr.mxu0 %v2835_v2 }
 0x362   : > { %2322 = vmatpush3.msra.mxu0 %v3175_v8 }
 0x363   : > { %2344 = vmatprep.subr.mxu0 %v2835_v2 }
 0x417   : > { %v753_v38 = vpop.f32.mrf.mxu0 }
 0x418   : > { %v754_v39 = vadd.f32 %v3194_v12, %v753_v38 }
 0x419   : > { %v2289_v40 = vpop.f32.mrf.mxu0 }
 0x41a   : > { %765 = vrot.lane.b32.xlu1 %v754_v39, %s2837_s7  ;;  %v757_v42 = vadd.f32 %v754_v39, %v682_v41 }
 0x41b   : > { %v1044_v26 = vpop.f32.mrf.mxu0 }
 0x41c   : > { %v2138_v43 = vmul.f32 -1.442695, %v757_v42  ;;  %v1045_v32 = vadd.f32 %v3203_v16, %v1044_v26  ;;  %v1155_v42 = vld [vmem:[%s1154_s13] sm:$0x3] }
 0x41d   : > { %v2314_v27 = vpop.f32.mrf.mxu0 }
 0x41e   : > { %2551 = vpow2.f32 %v2138_v43 }
 0x42b   : > { %v2552_v44 = vpop.eup %2551 }
 0x42c   : > { %v761_v45 = vadd.f32 1.0, %v2552_v44 }
 0x42e   : > { %2553 = vrcp.f32 %v761_v45 }
 0x43b   : > { %v2554_v46 = vpop.eup %2553 }
 0x43c   : > { %v775_v53 = vsub.f32 1.0, %v2554_v46  ;;  %v781_v55 = vmul.f32 %v2554_v46, %v599_v34 }
 0x48c   : > { %v766_v47 = vpop.permute.xlu1 %765 }
 0x48d   : > { %v768_v48 = vmul.f32 %v2554_v46, %v766_v47 }
 0x48f   : > { %770 = vrot.lane.b32.xlu0 %v768_v48, %s2837_s7 }
 0x501   : > { %v771_v49 = vpop.permute.xlu0 %770 }
 0x502   : > { %v773_v50 = vadd.f32 %v771_v49, %v682_v41 }
 0x504   : > { %2555 = vtanh.f32 %v773_v50 }
 0x511   : > { %v2556_v52 = vpop.eup %2555 }
 0x512   : > { %777 = vrot.lane.b32.xlu1 %v2556_v52, %s2838_s14 }
 0x584   : > { %v778_v54 = vpop.permute.xlu1 %777 }
 0x585   : > { %v780_v56 = vmul.f32 %v778_v54, %v775_v53 }
 0x587   : > { %v782_v57 = vadd.f32 %v781_v55, %v780_v56 }
 0x589   : > { %784 = vrot.lane.b32.xlu0 %v782_v57, %s2838_s14 }
 0x5fb   : > { %v785_v60 = vpop.permute.xlu0 %784 }
 0x5fc   : > { %2140 = vst.msk [vmem:[%s1983_s15 + $0x2] sm:$0x3] %vm605_vm4, %v785_v60  ;;  %2306 = vmatmul.mubr.msk.f32.vlgmr.msra.gmra.mxu1 %vm497_vm3, %v785_v60  ;;  %s2009_s15 = scalar_lea.vmem %s3134_s21, %s2159_s16 [#allocation9]  ;;  %s2183_s16 = sshll.u32 %s3584_s27, 4 }
 0x5fd   : > { %2327 = vmatpush3.msra.mxu1 %v3137_v1  ;;  %2330 = vmatprep.mubr.msk.f32.mxu1 %vm2836_vm1, %v2835_v2 }
 0x5fe   : > { %2328 = vmatprep.subr.mxu1 %v2835_v2 }
 0x5ff   : > { %2329 = vmatpush3.msra.mxu1 %v3141_v3 }
 0x600   : > { %2333 = vmatprep.subr.mxu1 %v2835_v2  ;;  %2331 = vmatmul.mubr.msk.f32.vlgmr.msra.gmra.mxu1 %vm417_vm2, %v1155_v42 }
 0x601   : > { %2334 = vmatpush3.msra.mxu1 %v3152_v5  ;;  %2341 = vmatprep.mubr.msk.f32.mxu1 %vm2836_vm1, %v2835_v2 }
 0x602   : > { %2335 = vmatprep.subr.mxu1 %v2835_v2 }
 0x603   : > { %2336 = vmatpush3.msra.mxu1 %v3160_v6 }
 0x604   : > { %2337 = vmatprep.subr.mxu1 %v2835_v2 }
 0x605   : > { %2338 = vmatpush3.msra.mxu1 %v3167_v7 }
 0x606   : > { %2339 = vmatprep.subr.mxu1 %v2835_v2 }
 0x607   : > { %2340 = vmatpush3.msra.mxu1 %v3175_v8 }
 0x608   : > { %2362 = vmatprep.subr.mxu1 %v2835_v2 }
 0x6bc   : > { %v935_v61 = vpop.f32.mrf.mxu1 }
 0x6bd   : > { %v936_v62 = vadd.f32 %v3194_v12, %v935_v61 }
 0x6be   : > { %v2307_v63 = vpop.f32.mrf.mxu1 }
 0x6bf   : > { %947 = vrot.lane.b32.xlu1 %v936_v62, %s2837_s7  ;;  %v939_v4 = vadd.f32 %v936_v62, %v864_v0 }
 0x6c0   : > { %v1225_v49 = vpop.f32.mrf.mxu1 }
 0x6c1   : > { %v2145_v9 = vmul.f32 -1.442695, %v939_v4  ;;  %v1226_v55 = vadd.f32 %v3203_v16, %v1225_v49  ;;  %v2160_v4 = vld [vmem:[%s2005_s10 + $0xa] sm:$0x3] }
 0x6c2   : > { %v2332_v50 = vpop.f32.mrf.mxu1 }
 0x6c3   : > { %2557 = vpow2.f32 %v2145_v9 }
 0x6d0   : > { %v2558_v10 = vpop.eup %2557 }
 0x6d1   : > { %v943_v11 = vadd.f32 1.0, %v2558_v10 }
 0x6d3   : > { %2559 = vrcp.f32 %v943_v11 }
 0x6e0   : > { %v2560_v13 = vpop.eup %2559 }
 0x6e1   : > { %v957_v21 = vsub.f32 1.0, %v2560_v13  ;;  %v963_v23 = vmul.f32 %v2560_v13, %v782_v57 }
 0x731   : > { %v948_v14 = vpop.permute.xlu1 %947 }
 0x732   : > { %v950_v15 = vmul.f32 %v2560_v13, %v948_v14 }
 0x734   : > { %952 = vrot.lane.b32.xlu0 %v950_v15, %s2837_s7 }
 0x7a6   : > { %v953_v17 = vpop.permute.xlu0 %952 }
 0x7a7   : > { %v955_v18 = vadd.f32 %v953_v17, %v864_v0 }
 0x7a9   : > { %2561 = vtanh.f32 %v955_v18 }
 0x7b6   : > { %v2562_v20 = vpop.eup %2561 }
 0x7b7   : > { %959 = vrot.lane.b32.xlu1 %v2562_v20, %s2838_s14 }
 0x829   : > { %v960_v22 = vpop.permute.xlu1 %959 }
 0x82a   : > { %v962_v24 = vmul.f32 %v960_v22, %v957_v21 }
 0x82c   : > { %v964_v25 = vadd.f32 %v963_v23, %v962_v24 }
 0x82e   : > { %966 = vrot.lane.b32.xlu0 %v964_v25, %s2838_s14 }
 0x8a0   : > { %v967_v28 = vpop.permute.xlu0 %966 }
 0x8a1   : > { %2147 = vst.msk [vmem:[%s1991_s24 + $0x4] sm:$0x3] %vm605_vm4, %v967_v28  ;;  %2324 = vmatmul.mubr.msk.f32.vlgmr.msra.gmra.mxu0 %vm497_vm3, %v967_v28  ;;  %s3587_s24 = sld [smem:[#allocation15_spill]] }
 0x8a2   : > { %2345 = vmatpush3.msra.mxu0 %v3137_v1  ;;  %2348 = vmatprep.mubr.msk.f32.mxu0 %vm2836_vm1, %v2835_v2 }
 0x8a3   : > { %2346 = vmatprep.subr.mxu0 %v2835_v2 }
 0x8a4   : > { %2347 = vmatpush3.msra.mxu0 %v3141_v3 }
 0x8a5   : > { %2351 = vmatprep.subr.mxu0 %v2835_v2  ;;  %2349 = vmatmul.mubr.msk.f32.vlgmr.msra.gmra.mxu0 %vm417_vm2, %v2160_v4 }
 0x8a6   : > { %2352 = vmatpush3.msra.mxu0 %v3152_v5  ;;  %2359 = vmatprep.mubr.msk.f32.mxu0 %vm2836_vm1, %v2835_v2 }
 0x8a7   : > { %2353 = vmatprep.subr.mxu0 %v2835_v2  ;;  %s2181_s3 = sshll.u32 %s3587_s24, 1 }
 0x8a8   : > { %2354 = vmatpush3.msra.mxu0 %v3160_v6 }
 0x8a9   : > { %2355 = vmatprep.subr.mxu0 %v2835_v2 }
 0x8aa   : > { %2356 = vmatpush3.msra.mxu0 %v3167_v7 }
 0x8ab   : > { %2357 = vmatprep.subr.mxu0 %v2835_v2 }
 0x8ac   : > { %2358 = vmatpush3.msra.mxu0 %v3175_v8 }
 0x8ad   : > { %2380 = vmatprep.subr.mxu0 %v2835_v2 }
 0x961   : > { %v1116_v29 = vpop.f32.mrf.mxu0 }
 0x962   : > { %v1117_v30 = vadd.f32 %v3194_v12, %v1116_v29 }
 0x963   : > { %v2325_v31 = vpop.f32.mrf.mxu0 }
 0x964   : > { %1128 = vrot.lane.b32.xlu1 %v1117_v30, %s2837_s7  ;;  %v1120_v33 = vadd.f32 %v1117_v30, %v1045_v32  ;;  %v2167_v31 = vld [vmem:[%s2013_s8 + $0xc] sm:$0x3]  ;;  %s2025_s8 = scalar_lea.vmem %s3134_s21, %s2173_s17 [#allocation9]  ;;  %s2840_s21 = smov [#allocation9]  }
 0x965   : > { %v1407_v17 = vpop.f32.mrf.mxu0  ;;  %s2681_s17 = sshll.u32 %s2840_s21, 4  ;;  %s2682_s17 = int_to_ptr.vmem [resolvable:$false] %s2681_s17 }
 0x966   : > { %v2152_v34 = vmul.f32 -1.442695, %v1120_v33  ;;  %p2684_p10 = scmp.lt.s32.totalorder %s3433_s0, %s2682_s17 }
 0x967   : > { %v2350_v18 = vpop.f32.mrf.mxu0 }
 0x968   : > { %2563 = vpow2.f32 %v2152_v34 }
 0x975   : > { %v2564_v35 = vpop.eup %2563 }
 0x976   : > { %v1124_v36 = vadd.f32 1.0, %v2564_v35 }
 0x978   : > { %2565 = vrcp.f32 %v1124_v36 }
 0x985   : > { %v2566_v37 = vpop.eup %2565 }
 0x986   : > { %v1138_v44 = vsub.f32 1.0, %v2566_v37  ;;  %v1144_v46 = vmul.f32 %v2566_v37, %v964_v25 }
 0x9d6   : > { %v1129_v38 = vpop.permute.xlu1 %1128 }
 0x9d7   : > { %v1131_v39 = vmul.f32 %v2566_v37, %v1129_v38 }
 0x9d9   : > { %1133 = vrot.lane.b32.xlu0 %v1131_v39, %s2837_s7 }
 0xa4b   : > { %v1134_v40 = vpop.permute.xlu0 %1133 }
 0xa4c   : > { %v1136_v41 = vadd.f32 %v1134_v40, %v1045_v32 }
 0xa4e   : > { %2567 = vtanh.f32 %v1136_v41 }
 0xa5b   : > { %v2568_v43 = vpop.eup %2567 }
 0xa5c   : > { %1140 = vrot.lane.b32.xlu1 %v2568_v43, %s2838_s14 }
 0xace   : > { %v1141_v45 = vpop.permute.xlu1 %1140 }
 0xacf   : > { %v1143_v47 = vmul.f32 %v1141_v45, %v1138_v44 }
 0xad1   : > { %v1145_v48 = vadd.f32 %v1144_v46, %v1143_v47 }
 0xad3   : > { %1147 = vrot.lane.b32.xlu0 %v1145_v48, %s2838_s14 }
 0xb45   : > { %v1148_v51 = vpop.permute.xlu0 %1147 }
 0xb46   : > { %2154 = vst.msk [vmem:[%s1997_s28 + $0x6] sm:$0x3] %vm605_vm4, %v1148_v51  ;;  %2342 = vmatmul.mubr.msk.f32.vlgmr.msra.gmra.mxu1 %vm497_vm3, %v1148_v51 }
 0xb47   : > { %2363 = vmatpush3.msra.mxu1 %v3137_v1  ;;  %2366 = vmatprep.mubr.msk.f32.mxu1 %vm2836_vm1, %v2835_v2 }
 0xb48   : > { %2364 = vmatprep.subr.mxu1 %v2835_v2 }
 0xb49   : > { %2365 = vmatpush3.msra.mxu1 %v3141_v3 }
 0xb4a   : > { %2369 = vmatprep.subr.mxu1 %v2835_v2  ;;  %2367 = vmatmul.mubr.msk.f32.vlgmr.msra.gmra.mxu1 %vm417_vm2, %v2167_v31 }
 0xb4b   : > { %2370 = vmatpush3.msra.mxu1 %v3152_v5  ;;  %2377 = vmatprep.mubr.msk.f32.mxu1 %vm2836_vm1, %v2835_v2 }
 0xb4c   : > { %2371 = vmatprep.subr.mxu1 %v2835_v2 }
 0xb4d   : > { %2372 = vmatpush3.msra.mxu1 %v3160_v6 }
 0xb4e   : > { %2373 = vmatprep.subr.mxu1 %v2835_v2 }
 0xb4f   : > { %2374 = vmatpush3.msra.mxu1 %v3167_v7 }
 0xb50   : > { %2375 = vmatprep.subr.mxu1 %v2835_v2 }
 0xb51   : > { %2376 = vmatpush3.msra.mxu1 %v3175_v8 }
 0xc06   : > { %v1297_v52 = vpop.f32.mrf.mxu1 }
 0xc07   : > { %v1298_v53 = vadd.f32 %v3194_v12, %v1297_v52 }
 0xc08   : > { %v2343_v54 = vpop.f32.mrf.mxu1 }
 0xc09   : > { %1309 = vrot.lane.b32.xlu1 %v1298_v53, %s2837_s7  ;;  %v1301_v56 = vadd.f32 %v1298_v53, %v1226_v55  ;;  %v2174_v54 = vld [vmem:[%s2021_s5 + $0xe] sm:$0x3] }
 0xc0a   : > { %v1589_v38 = vpop.f32.mrf.mxu1 }
 0xc0b   : > { %v2158_v57 = vmul.f32 -1.442695, %v1301_v56  ;;  %v1590_v44 = vadd.f32 %v3203_v16, %v1589_v38 }
 0xc0c   : > { %v2368_v39 = vpop.f32.mrf.mxu1 }
 0xc0d   : > { %2569 = vpow2.f32 %v2158_v57 }
 0xc1a   : > { %v2570_v58 = vpop.eup %2569 }
 0xc1b   : > { %v1305_v59 = vadd.f32 1.0, %v2570_v58 }
 0xc1d   : > { %2571 = vrcp.f32 %v1305_v59 }
 0xc2a   : > { %v2572_v60 = vpop.eup %2571 }
 0xc2b   : > { %v1319_v10 = vsub.f32 1.0, %v2572_v60  ;;  %v1325_v13 = vmul.f32 %v2572_v60, %v1145_v48 }
 0xc7b   : > { %v1310_v61 = vpop.permute.xlu1 %1309 }
 0xc7c   : > { %v1312_v62 = vmul.f32 %v2572_v60, %v1310_v61 }
 0xc7e   : > { %1314 = vrot.lane.b32.xlu0 %v1312_v62, %s2837_s7 }
 0xcf0   : > { %v1315_v63 = vpop.permute.xlu0 %1314 }
 0xcf1   : > { %v1317_v0 = vadd.f32 %v1315_v63, %v1226_v55 }
 0xcf3   : > { %2573 = vtanh.f32 %v1317_v0 }
 0xd00   : > { %v2574_v9 = vpop.eup %2573 }
 0xd01   : > { %1321 = vrot.lane.b32.xlu1 %v2574_v9, %s2838_s14 }
 0xd73   : > { %v1322_v11 = vpop.permute.xlu1 %1321 }
 0xd74   : > { %v1324_v14 = vmul.f32 %v1322_v11, %v1319_v10 }
 0xd76   : > { %v1326_v15 = vadd.f32 %v1325_v13, %v1324_v14 }
 0xd78   : > { %1328 = vrot.lane.b32.xlu0 %v1326_v15, %s2838_s14 }
 0xdea   : > { %v1329_v19 = vpop.permute.xlu0 %1328 }
 0xdeb   : > { %1332 = vst.msk [vmem:[%s1331_s26] sm:$0x3] %vm605_vm4, %v1329_v19  ;;  %2360 = vmatmul.mubr.msk.f32.vlgmr.msra.gmra.mxu0 %vm497_vm3, %v1329_v19 }
 0xdec   : > { %2381 = vmatpush3.msra.mxu0 %v3137_v1  ;;  %2384 = vmatprep.mubr.msk.f32.mxu0 %vm2836_vm1, %v2835_v2  ;;  %v1408_v1 = vadd.f32 %v3203_v16, %v1407_v17 }
 0xded   : > { %2382 = vmatprep.subr.mxu0 %v2835_v2 }
 0xdee   : > { %2383 = vmatpush3.msra.mxu0 %v3141_v3 }
 0xdef   : > { %2387 = vmatprep.subr.mxu0 %v2835_v2  ;;  %2385 = vmatmul.mubr.msk.f32.vlgmr.msra.gmra.mxu0 %vm417_vm2, %v2174_v54 }
 0xdf0   : > { %2388 = vmatpush3.msra.mxu0 %v3152_v5  ;;  %2395 = vmatprep.mubr.msk.f32.mxu0 %vm2836_vm1, %v2835_v2 }
 0xdf1   : > { %2389 = vmatprep.subr.mxu0 %v2835_v2 }
 0xdf2   : > { %2390 = vmatpush3.msra.mxu0 %v3160_v6 }
 0xdf3   : > { %2391 = vmatprep.subr.mxu0 %v2835_v2 }
 0xdf4   : > { %2392 = vmatpush3.msra.mxu0 %v3167_v7 }
 0xdf5   : > { %2393 = vmatprep.subr.mxu0 %v2835_v2 }
 0xdf6   : > { %2394 = vmatpush3.msra.mxu0 %v3175_v8 }
 0xeab   : > { %v1479_v20 = vpop.f32.mrf.mxu0 }
 0xeac   : > { %v1480_v21 = vadd.f32 %v3194_v12, %v1479_v20 }
 0xead   : > { %v2361_v22 = vpop.f32.mrf.mxu0 }
 0xeae   : > { %1491 = vrot.lane.b32.xlu1 %v1480_v21, %s2837_s7  ;;  %v1483_v23 = vadd.f32 %v1480_v21, %v1408_v1 }
 0xeaf   : > { %v1771_v60 = vpop.f32.mrf.mxu0 }
 0xeb0   : > { %v2163_v24 = vmul.f32 -1.442695, %v1483_v23  ;;  %v1772_v62 = vadd.f32 %v3203_v16, %v1771_v60 }
 0xeb1   : > { %v2386_v6 = vpop.f32.mrf.mxu0 }
 0xeb2   : > { %2575 = vpow2.f32 %v2163_v24 }
 0xebf   : > { %v2576_v25 = vpop.eup %2575 }
 0xec0   : > { %v1487_v26 = vadd.f32 1.0, %v2576_v25 }
 0xec2   : > { %2577 = vrcp.f32 %v1487_v26 }
 0xecf   : > { %v2578_v3 = vpop.eup %2577 }
 0xed0   : > { %v1501_v33 = vsub.f32 1.0, %v2578_v3  ;;  %v1507_v35 = vmul.f32 %v2578_v3, %v1326_v15 }
 0xf20   : > { %v1492_v27 = vpop.permute.xlu1 %1491 }
 0xf21   : > { %v1494_v28 = vmul.f32 %v2578_v3, %v1492_v27 }
 0xf23   : > { %1496 = vrot.lane.b32.xlu0 %v1494_v28, %s2837_s7 }
 0xf95   : > { %v1497_v29 = vpop.permute.xlu0 %1496 }
 0xf96   : > { %v1499_v30 = vadd.f32 %v1497_v29, %v1408_v1 }
 0xf98   : > { %2579 = vtanh.f32 %v1499_v30 }
 0xfa5   : > { %v2580_v32 = vpop.eup %2579 }
 0xfa6   : > { %1503 = vrot.lane.b32.xlu1 %v2580_v32, %s2838_s14 }
0x1018   : > { %v1504_v34 = vpop.permute.xlu1 %1503 }
0x1019   : > { %v1506_v36 = vmul.f32 %v1504_v34, %v1501_v33 }
0x101b   : > { %v1508_v37 = vadd.f32 %v1507_v35, %v1506_v36 }
0x101d   : > { %1510 = vrot.lane.b32.xlu0 %v1508_v37, %s2838_s14 }
0x108f   : > { %v1511_v40 = vpop.permute.xlu0 %1510 }
0x1090   : > { %2165 = vst.msk [vmem:[%s2009_s15 + $0xa] sm:$0x3] %vm605_vm4, %v1511_v40  ;;  %2378 = vmatmul.mubr.msk.f32.vlgmr.msra.gmra.mxu1 %vm497_vm3, %v1511_v40 }
0x1150   : > { %v1661_v41 = vpop.f32.mrf.mxu1 }
0x1151   : > { %v1662_v42 = vadd.f32 %v3194_v12, %v1661_v41 }
0x1152   : > { %v2379_v43 = vpop.f32.mrf.mxu1 }
0x1153   : > { %1673 = vrot.lane.b32.xlu1 %v1662_v42, %s2837_s7  ;;  %v1665_v45 = vadd.f32 %v1662_v42, %v1590_v44 }
0x1155   : > { %v2170_v46 = vmul.f32 -1.442695, %v1665_v45 }
0x1157   : > { %2581 = vpow2.f32 %v2170_v46 }
0x1164   : > { %v2582_v47 = vpop.eup %2581 }
0x1165   : > { %v1669_v48 = vadd.f32 1.0, %v2582_v47 }
0x1167   : > { %2583 = vrcp.f32 %v1669_v48 }
0x1174   : > { %v2584_v49 = vpop.eup %2583 }
0x1175   : > { %v1683_v5 = vsub.f32 1.0, %v2584_v49  ;;  %v1689_v57 = vmul.f32 %v2584_v49, %v1508_v37 }
0x11c5   : > { %v1674_v50 = vpop.permute.xlu1 %1673 }
0x11c6   : > { %v1676_v51 = vmul.f32 %v2584_v49, %v1674_v50 }
0x11c8   : > { %1678 = vrot.lane.b32.xlu0 %v1676_v51, %s2837_s7 }
0x123a   : > { %v1679_v52 = vpop.permute.xlu0 %1678 }
0x123b   : > { %v1681_v53 = vadd.f32 %v1679_v52, %v1590_v44 }
0x123d   : > { %2585 = vtanh.f32 %v1681_v53 }
0x124a   : > { %v2586_v55 = vpop.eup %2585 }
0x124b   : > { %1685 = vrot.lane.b32.xlu1 %v2586_v55, %s2838_s14 }
0x12bd   : > { %v1686_v56 = vpop.permute.xlu1 %1685 }
0x12be   : > { %v1688_v58 = vmul.f32 %v1686_v56, %v1683_v5 }
0x12c0   : > { %v1690_v59 = vadd.f32 %v1689_v57, %v1688_v58 }
0x12c2   : > { %1692 = vrot.lane.b32.xlu0 %v1690_v59, %s2838_s14 }
0x1334   : > { %v1693_v61 = vpop.permute.xlu0 %1692 }
0x1335   : > { %2172 = vst.msk [vmem:[%s2017_s9 + $0xc] sm:$0x3] %vm605_vm4, %v1693_v61  ;;  %2396 = vmatmul.mubr.msk.f32.vlgmr.msra.gmra.mxu0 %vm497_vm3, %v1693_v61  ;;  %s3588_s9 = sld [smem:[#allocation27_spill]] }
0x13f5   : > { %v1843_v7 = vpop.f32.mrf.mxu0 }
0x13f6   : > { %v1844_v2 = vadd.f32 %v3194_v12, %v1843_v7 }
0x13f7   : > { %v2397_v8 = vpop.f32.mrf.mxu0 }
0x13f8   : > { %1855 = vrot.lane.b32.xlu1 %v1844_v2, %s2837_s7  ;;  %v1847_v63 = vadd.f32 %v1844_v2, %v1772_v62 }
0x13fa   : > { %v2177_v0 = vmul.f32 -1.442695, %v1847_v63 }
0x13fc   : > { %2587 = vpow2.f32 %v2177_v0 }
0x1409   : > { %v2588_v4 = vpop.eup %2587 }
0x140a   : > { %v1851_v9 = vadd.f32 1.0, %v2588_v4 }
0x140c   : > { %2589 = vrcp.f32 %v1851_v9 }
0x1419   : > { %v2590_v10 = vpop.eup %2589 }
0x141a   : > { %v1865_v16 = vsub.f32 1.0, %v2590_v10  ;;  %v1871_v18 = vmul.f32 %v2590_v10, %v1690_v59 }
0x146a   : > { %v1856_v11 = vpop.permute.xlu1 %1855 }
0x146b   : > { %v1858_v13 = vmul.f32 %v2590_v10, %v1856_v11 }
0x146d   : > { %1860 = vrot.lane.b32.xlu0 %v1858_v13, %s2837_s7  ;;  %s1889_s7 = ssub.s32 1, %s2181_s3 }
0x146e   : > { %s1890_s29 = smul.u32 %s3584_s27, %s1889_s7  ;;  %s2677_s27 = scalar_lea.vmem %s3433_s0, 256 }
0x146f   : > { %p2678_p4 = scmp.ne.s32.totalorder %s3433_s0, %s2677_s27 }
0x1470   : > { %s1891_s13 = sadd.s32 %s3587_s24, %s1890_s29  ;;  %s2683_s24 = scalar_lea.vmem %s2682_s17, 512 }
0x1471   : > { %s2182_s28 = sshll.u32 %s1891_s13, 3  ;;  %p2679_p7 = pnand %p2678_p4, %p3589_p6 }
0x1472   : > { %s1897_s10 = sadd.s32 %s2183_s16, %s2182_s28  ;;  %p2685_p5 = scmp.lt.s32.totalorder %s2683_s24, %s2677_s27 }
0x1473   : > { %s2184_s26 = sshll.u32 %s1897_s10, 5  ;;  %p2680_p8 = pneg %p2679_p7 }
0x1474   : > { %s3431_s12 = scalar_lea.hbm %s3588_s9, %s2184_s26  ;;  %p2686_p12 = por %p2685_p5, %p2684_p10 }
0x1476   : > { %p2687_p13 = pnand %p2686_p12, %p2680_p8 }
0x14df   : > { %v1861_v12 = vpop.permute.xlu0 %1860 }
0x14e0   : > { %v1863_v14 = vadd.f32 %v1861_v12, %v1772_v62 }
0x14e2   : > { %2591 = vtanh.f32 %v1863_v14 }
0x14ef   : > { %v2592_v15 = vpop.eup %2591 }
0x14f0   : > { %1867 = vrot.lane.b32.xlu1 %v2592_v15, %s2838_s14 }
0x1562   : > { %v1868_v17 = vpop.permute.xlu1 %1867 }
0x1563   : > { %v1870_v19 = vmul.f32 %v1868_v17, %v1865_v16 }
0x1565   : > { %v1872_v20 = vadd.f32 %v1871_v18, %v1870_v19 }
0x1567   : > { %1874 = vrot.lane.b32.xlu0 %v1872_v20, %s2838_s14  ;;  %s3439_s14 = scalar_lea.sflag [#allocation5], %s373_s4 }
0x15d9   : > { %v1875_v21 = vpop.permute.xlu0 %1874 }
0x15da   : > { %2179 = vst.msk [vmem:[%s2025_s8 + $0xe] sm:$0x3] %vm605_vm4, %v1875_v21  ;;  %1879 = vst.msk [vmem:[#allocation2] sm:$0x3] %vm605_vm4, %v1875_v21 }
0x15db   : > { %2690 = shalt.err (!%p2687_p13)
}
0x15dc   : > { %s2691_s4 = scalar_lea.hbm %s3431_s12, 256  ;;  %s2695_s29 = scalar_lea.hbm %s3588_s9, 1024 }
0x15dd   : > { %p2692_p0 = scmp.ne.s32.totalorder %s3431_s12, %s2691_s4  ;;  %p2696_p9 = scmp.lt.s32.totalorder %s3431_s12, %s3588_s9 }
0x15de   : > { %p2697_p11 = scmp.lt.s32.totalorder %s2695_s29, %s2691_s4 }
0x15df   : > { %p2693_p2 = pnand %p2692_p0, %p3589_p6 }
0x15e0   : > { %p2698_p1 = por %p2697_p11, %p2696_p9 }
0x15e1   : > { %p2694_p3 = pneg %p2693_p2 }
0x15e3   : > { %p2699_p4 = pnand %p2698_p1, %p2694_p3 }
0x15e5   : > { %2702 = shalt.err (!%p2699_p4)
}
0x15e6   : > { %s2841_s16 = smov 2   ;;  %s3590_s10 = smov 32  }
0x15e7   : > { %2404 = dma.vmem_to_hbm [thread:$0]  (%p3589_p6), %s3433_s0, 256, %s3431_s12, %s3439_s14, %s3590_s10, %s3590_s10, %s2841_s16  }
0x15e8 PF: > { %p2421_p7 = scmp.ge.s32.totalorder %s2825_s6, 2  ;;  %s1915_s26 = sand.u32 1, %s2773_s18  }
0x15e9   : > { %p3591_p8 = scmp.ne.s32.totalorder %s3567_s1, 0  ;;  %s1916_s8 = scalar_lea.sflag [#allocation5], %s1915_s26 }
0x15eb   : > { %p2417_p10 = pnand %p2421_p7, %p3591_p8 }
0x15ed   : > { %p2418_p5 = pneg %p2417_p10 }
0x15ef   : > { %2768 = dma.done.wait (%p2418_p5), %s1916_s8, 256  }
0x15f0   : > { %2770 = vsyncadd (%p2418_p5), %s1916_s8, 4294967040  ;;  %s24_s6 = sadd.s32 1, %s2825_s6   ;;  %s3593_s21 = sld [smem:[#allocation13_spill]] }
0x15f1   : > { %p3469_p12 = scmp.ge.s32.totalorder %s24_s6, 6   ;;  %s3594_s12 = sld [smem:[#allocation21_spill]] }
0x15f2   : > { %s3595_s0 = sld [smem:[#allocation14_spill]]  ;;  %s3600_s18 = smov %s2777_s19 }
0x15f3   : > { %s3596_s26 = sld [smem:[#allocation22_spill]]  ;;  %s3601_s19 = smov %s2781_s20 }
0x15f4   : > { %s3597_s27 = sld [smem:[#allocation17_spill]]  ;;  %s3602_s20 = smov %s3041_s22 }
0x15f5   : > { %s3598_s29 = sld [smem:[#allocation19_spill]]  ;;  %s3603_s22 = smov %s2793_s23 }
0x15f6   : > { %s3599_s1 = sld [smem:[#allocation20_spill]]  ;;  %s3605_s24 = smov %s2801_s25 }
0x15f7   : > { %s3604_s23 = smov %s3594_s12  ;;  %s3607_s28 = smov %s2821_s30 }
0x15f8   : > { %s3606_s25 = smov %s3595_s0  ;;  %23 = sbr.rel (!%p3469_p12) target bundleno = 18 (0x12), region = 135 }
0x15fc   : > { %s3608_s30 = smov %s3599_s1 }
0x15fd   :  { %1921 = vsyncpa [#allocation4], 1 }
0x15fe   :  { %1923 = vsyncpa [#allocation4 + $0x1], 1 }
0x15ff   :  { %1924 = vsyncpa [#allocation7], 1 }
0x1600   :  { %1926 = vsyncpa [#allocation7 + $0x1], 1 }
0x1601   :  { %1927 = vsyncpa [#allocation5], 1 }
0x1602   :  { %1929 = vsyncpa [#allocation5 + $0x1], 1 }

</bundles_post_ra>
